<compile_context>
chip_gen: v7x
topology: tpu7x:2x2x1
jax: 0.10.0
libtpu: 0.0.40
codegen_flags: <defaults>
</compile_context>

<pallas_src>
import math

import jax
import jax.numpy as jnp
from jax.experimental import pallas as pl
from jax.experimental.pallas import tpu as pltpu

LANE = 128                                # per-gate lane stride (vreg width)
GATE_ORDER_PT = ("i", "f", "g", "o")      # PyTorch nn.LSTM gate order
GATE_ORDER_KERNEL = ("i", "f", "o", "g")  # sigmoid gates contiguous, tanh last


# --------------------------------------------------------------------------
# Kernel
# --------------------------------------------------------------------------
def lstm_kernel(x_ref, w_ih_ref, w_hh_ref, b_ref, w_out_ref, b_out_ref,
                out_ref):
    B, T, I = x_ref.shape
    Hp = w_hh_ref.shape[0]          # padded hidden size (128)
    G4 = w_hh_ref.shape[1]          # 4 * 128 = 512
    G = G4 // 4                     # per-gate lane stride (128)
    O = out_ref.shape[1]

    x = x_ref[...].astype(jnp.float32)      # (B, T, I)
    w_ih = w_ih_ref[...]                    # (I, G4)
    w_hh = w_hh_ref[...]                    # (Hp, G4)
    b = b_ref[...]                          # (1, G4)

    # ---- Hoisted input projection (off the serial critical path) ----------
    # I == 1  ->  pure VPU broadcast multiply; (B, T, G4) = (2, 8, 512) is
    # sublane-dense (T == 8) -> 8 vregs / 32 KiB, no transpose needed.
    if I == 1:
        x_proj = x * w_ih.reshape(1, 1, G4) + b.reshape(1, 1, G4)
    else:
        x_proj = jax.lax.dot_general(
            x.reshape(B * T, I), w_ih, (((1,), (0,)), ((), ())),
            preferred_element_type=jnp.float32,
        ).reshape(B, T, G4) + b.reshape(1, 1, G4)

    # ---- Recurrence: only (B,Hp)@(Hp,G4) + elementwise on the chain -------
    # Padded lanes [H:128) of h/c stay exactly 0: their pre-activations are 0
    # (zero-padded weights/bias), so i=f=o=0.5, g=0, c_new=0, h_new=0.
    h = jnp.zeros((B, Hp), jnp.float32)
    c = jnp.zeros((B, Hp), jnp.float32)

    for t in range(T):              # fully unrolled, literal t -> static slices
        pre = x_proj[:, t, :] + jnp.dot(h, w_hh,
                                        preferred_element_type=jnp.float32)
        # Gate layout [i | f | o | g], every slice 128-lane aligned.
        sig = jax.nn.sigmoid(pre[:, :3 * G])      # one EUP pass for i, f, o
        i_g = sig[:, 0 * G:1 * G]
        f_g = sig[:, 1 * G:2 * G]
        o_g = sig[:, 2 * G:3 * G]
        g_g = jnp.tanh(pre[:, 3 * G:4 * G])       # one tanh pass for g
        c = f_g * c + i_g * g_g
        h = o_g * jnp.tanh(c)

    # ---- Final Linear on the last hidden state -----------------------------
    if O == 1:
        # Degenerate N=1 matmul -> VPU multiply + lane reduction instead.
        out = (jnp.sum(h * w_out_ref[...], axis=-1, keepdims=True)
               + b_out_ref[...])
    else:
        out = jax.lax.dot_general(
            h, w_out_ref[...], (((1,), (1,)), ((), ())),
            preferred_element_type=jnp.float32) + b_out_ref[...]
    out_ref[...] = out


# --------------------------------------------------------------------------
# Wrapper
# --------------------------------------------------------------------------
@jax.jit
def lstm_model_forward(x, w_ih_p, w_hh_p, b_p, w_out_p, b_out):
    """x: (B, T, I) batch-first, exactly as the PyTorch module receives it.
    Weights must already be in the padded kernel layout (see pack_params).
    Returns (B, O)."""
    B, T, I = x.shape
    O = w_out_p.shape[0]
    vmem = lambda: pl.BlockSpec(memory_space=pltpu.MemorySpace.VMEM)
    return pl.pallas_call(
        lstm_kernel,
        out_shape=jax.ShapeDtypeStruct((B, O), jnp.float32),
        in_specs=[vmem() for _ in range(6)],
        out_specs=vmem(),
    )(x, w_ih_p, w_hh_p, b_p, w_out_p, b_out)


def pack_params(w_ih, w_hh, b, w_out, b_out):
    """Pack PyTorch-layout fused LSTM params (gate order i,f,g,o along the 4H
    axis: w_ih=(I,4H)=weight_ih_l0.T, w_hh=(H,4H)=weight_hh_l0.T,
    b=(1,4H)=bias_ih+bias_hh, w_out=(H,O), b_out=(1,O)) into the lane-padded
    kernel layout (gate order i,f,o,g; per-gate stride 128; hidden axis padded
    to 128).  Done once at parameter-setup time, not per forward call."""
    H = w_hh.shape[0]
    Hp = ((H + LANE - 1) // LANE) * LANE

    def gate_slices(m):
        return {name: m[..., k * H:(k + 1) * H]
                for k, name in enumerate(GATE_ORDER_PT)}

    def pad_last(m, width):
        pad = [(0, 0)] * (m.ndim - 1) + [(0, width - m.shape[-1])]
        return jnp.pad(m, pad)

    ih, hh, bb = gate_slices(w_ih), gate_slices(w_hh), gate_slices(b)
    w_ih_p = jnp.concatenate([pad_last(ih[g], Hp) for g in GATE_ORDER_KERNEL],
                             axis=-1).astype(jnp.float32)           # (I, 4Hp)
    w_hh_p = jnp.concatenate([pad_last(hh[g], Hp) for g in GATE_ORDER_KERNEL],
                             axis=-1)
    w_hh_p = jnp.pad(w_hh_p, ((0, Hp - H), (0, 0))).astype(jnp.float32)  # (Hp, 4Hp)
    b_p = jnp.concatenate([pad_last(bb[g], Hp) for g in GATE_ORDER_KERNEL],
                          axis=-1).astype(jnp.float32)               # (1, 4Hp)
    w_out_p = pad_last(jnp.transpose(w_out), Hp).astype(jnp.float32)  # (O, Hp)
    return w_ih_p, w_hh_p, b_p, w_out_p, b_out.astype(jnp.float32)


# --------------------------------------------------------------------------
# Pure-JAX reference (mirrors torch nn.LSTM + Linear semantics)
# --------------------------------------------------------------------------
def lstm_model_reference(x_btI, w_ih, w_hh, b, w_out, b_out):
    B, T, I = x_btI.shape
    H = w_hh.shape[0]

    def step(carry, x_t):
        h, c = carry
        pre = x_t @ w_ih + h @ w_hh + b                  # (B, 4H)
        i_g = jax.nn.sigmoid(pre[:, 0 * H:1 * H])
        f_g = jax.nn.sigmoid(pre[:, 1 * H:2 * H])
        g_g = jnp.tanh(pre[:, 2 * H:3 * H])
        o_g = jax.nn.sigmoid(pre[:, 3 * H:4 * H])
        c_new = f_g * c + i_g * g_g
        h_new = o_g * jnp.tanh(c_new)
        return (h_new, c_new), None

    h0 = jnp.zeros((B, H), jnp.float32)
    c0 = jnp.zeros((B, H), jnp.float32)
    (h_last, _), _ = jax.lax.scan(step, (h0, c0),
                                  jnp.transpose(x_btI, (1, 0, 2)))
    return h_last @ w_out + b_out


if __name__ == "__main__":
    # Module hyperparameters (LSTMModel.__init__ defaults).
    INPUT_SIZE = 1
    HIDDEN_SIZE = 50
    OUTPUT_SIZE = 1
    B, T = 2, 8

    key = jax.random.PRNGKey(0)
    keys = jax.random.split(key, 7)
    bound = 1.0 / math.sqrt(HIDDEN_SIZE)

    def uniform(k, shape):
        return jax.random.uniform(k, shape, jnp.float32, -bound, bound)

    # PyTorch-equivalent fused parameters (gate order i, f, g, o):
    # weight_ih_l0.T, weight_hh_l0.T, bias_ih_l0 + bias_hh_l0, linear.weight.T,
    # linear.bias.
    w_ih = uniform(keys[0], (INPUT_SIZE, 4 * HIDDEN_SIZE))
    w_hh = uniform(keys[1], (HIDDEN_SIZE, 4 * HIDDEN_SIZE))
    b_ih = uniform(keys[2], (1, 4 * HIDDEN_SIZE))
    b_hh = uniform(keys[3], (1, 4 * HIDDEN_SIZE))
    b = b_ih + b_hh
    w_out = uniform(keys[4], (HIDDEN_SIZE, OUTPUT_SIZE))
    b_out = uniform(keys[5], (1, OUTPUT_SIZE))

    # Input: batch-first (B, T, input_size) like the PyTorch module expects.
    x = jax.random.normal(keys[6], (B, T, INPUT_SIZE), jnp.float32)

    packed = pack_params(w_ih, w_hh, b, w_out, b_out)   # one-time weight prep
    out = lstm_model_forward(x, *packed)
    out = jax.block_until_ready(out)

    ref = lstm_model_reference(x, w_ih, w_hh, b, w_out, b_out)
    assert out.shape == (B, OUTPUT_SIZE)
    assert jnp.allclose(out, ref, atol=1e-5, rtol=1e-5), (out, ref)

    print("KERNEL_OK")
</pallas_src>

<mosaic_0001>
module attributes {stable_mosaic.version = 11 : i64} {
  func.func @lstm_kernel(%arg0: memref<2x8x1xf32, #tpu.memory_space<vmem>>, %arg1: memref<1x512xf32, #tpu.memory_space<vmem>>, %arg2: memref<128x512xf32, #tpu.memory_space<vmem>>, %arg3: memref<1x512xf32, #tpu.memory_space<vmem>>, %arg4: memref<1x128xf32, #tpu.memory_space<vmem>>, %arg5: memref<1x1xf32, #tpu.memory_space<vmem>>, %arg6: memref<2x1xf32, #tpu.memory_space<vmem>>) attributes {dimension_semantics = [], scalar_prefetch = 0 : i64, scratch_operands = 0 : i64, tpu.core_type = #tpu.core_type<tc>} {
    %c0 = arith.constant 0 : index
    %c0_0 = arith.constant 0 : index
    %c0_1 = arith.constant 0 : index
    %0 = vector.load %arg0[%c0, %c0_0, %c0_1] : memref<2x8x1xf32, #tpu.memory_space<vmem>>, vector<2x8x1xf32>
    %c0_2 = arith.constant 0 : index
    %c0_3 = arith.constant 0 : index
    %1 = vector.load %arg1[%c0_2, %c0_3] : memref<1x512xf32, #tpu.memory_space<vmem>>, vector<1x512xf32>
    %c0_4 = arith.constant 0 : index
    %c0_5 = arith.constant 0 : index
    %2 = vector.load %arg2[%c0_4, %c0_5] : memref<128x512xf32, #tpu.memory_space<vmem>>, vector<128x512xf32>
    %c0_6 = arith.constant 0 : index
    %c0_7 = arith.constant 0 : index
    %3 = vector.load %arg3[%c0_6, %c0_7] : memref<1x512xf32, #tpu.memory_space<vmem>>, vector<1x512xf32>
    %4 = vector.shape_cast %1 : vector<1x512xf32> to vector<1x1x512xf32>
    %5 = vector.broadcast %0 : vector<2x8x1xf32> to vector<2x8x512xf32>
    %6 = vector.broadcast %4 : vector<1x1x512xf32> to vector<2x8x512xf32>
    %7 = arith.mulf %5, %6 : vector<2x8x512xf32>
    %8 = vector.shape_cast %3 : vector<1x512xf32> to vector<1x1x512xf32>
    %9 = vector.broadcast %8 : vector<1x1x512xf32> to vector<2x8x512xf32>
    %10 = arith.addf %7, %9 : vector<2x8x512xf32>
    %cst = arith.constant 0.000000e+00 : f32
    %11 = vector.broadcast %cst : f32 to vector<2x128xf32>
    %cst_8 = arith.constant 0.000000e+00 : f32
    %12 = vector.broadcast %cst_8 : f32 to vector<2x128xf32>
    %13 = vector.extract_strided_slice %10 {offsets = [0, 0, 0], sizes = [2, 1, 512], strides = [1, 1, 1]} : vector<2x8x512xf32> to vector<2x1x512xf32>
    %14 = vector.shape_cast %13 : vector<2x1x512xf32> to vector<2x512xf32>
    %cst_9 = arith.constant dense<0.000000e+00> : vector<2x512xf32>
    %15 = tpu.matmul %11, %2, %cst_9 {dimension_numbers = #tpu.dot_dimension_numbers<[1], [0], [0], [1], [0, 0, 1, 1], [], []>} : vector<2x128xf32>, vector<128x512xf32>, vector<2x512xf32> -> vector<2x512xf32>
    %16 = arith.addf %14, %15 : vector<2x512xf32>
    %17 = vector.extract_strided_slice %16 {offsets = [0, 0], sizes = [2, 384], strides = [1, 1]} : vector<2x512xf32> to vector<2x384xf32>
    %18 = arith.negf %17 : vector<2x384xf32>
    %19 = math.exp %18 : vector<2x384xf32>
    %cst_10 = arith.constant 1.000000e+00 : f32
    %20 = vector.broadcast %cst_10 : f32 to vector<2x384xf32>
    %21 = arith.addf %20, %19 : vector<2x384xf32>
    %22 = arith.divf %20, %21 : vector<2x384xf32>
    %23 = vector.extract_strided_slice %22 {offsets = [0, 0], sizes = [2, 128], strides = [1, 1]} : vector<2x384xf32> to vector<2x128xf32>
    %24 = vector.extract_strided_slice %22 {offsets = [0, 128], sizes = [2, 128], strides = [1, 1]} : vector<2x384xf32> to vector<2x128xf32>
    %25 = vector.extract_strided_slice %22 {offsets = [0, 256], sizes = [2, 128], strides = [1, 1]} : vector<2x384xf32> to vector<2x128xf32>
    %26 = vector.extract_strided_slice %16 {offsets = [0, 384], sizes = [2, 128], strides = [1, 1]} : vector<2x512xf32> to vector<2x128xf32>
    %27 = math.tanh %26 : vector<2x128xf32>
    %28 = arith.mulf %24, %12 : vector<2x128xf32>
    %29 = arith.mulf %23, %27 : vector<2x128xf32>
    %30 = arith.addf %28, %29 : vector<2x128xf32>
    %31 = math.tanh %30 : vector<2x128xf32>
    %32 = arith.mulf %25, %31 : vector<2x128xf32>
    %33 = vector.extract_strided_slice %10 {offsets = [0, 1, 0], sizes = [2, 1, 512], strides = [1, 1, 1]} : vector<2x8x512xf32> to vector<2x1x512xf32>
    %34 = vector.shape_cast %33 : vector<2x1x512xf32> to vector<2x512xf32>
    %cst_11 = arith.constant dense<0.000000e+00> : vector<2x512xf32>
    %35 = tpu.matmul %32, %2, %cst_11 {dimension_numbers = #tpu.dot_dimension_numbers<[1], [0], [0], [1], [0, 0, 1, 1], [], []>} : vector<2x128xf32>, vector<128x512xf32>, vector<2x512xf32> -> vector<2x512xf32>
    %36 = arith.addf %34, %35 : vector<2x512xf32>
    %37 = vector.extract_strided_slice %36 {offsets = [0, 0], sizes = [2, 384], strides = [1, 1]} : vector<2x512xf32> to vector<2x384xf32>
    %38 = arith.negf %37 : vector<2x384xf32>
    %39 = math.exp %38 : vector<2x384xf32>
    %cst_12 = arith.constant 1.000000e+00 : f32
    %40 = vector.broadcast %cst_12 : f32 to vector<2x384xf32>
    %41 = arith.addf %40, %39 : vector<2x384xf32>
    %42 = arith.divf %40, %41 : vector<2x384xf32>
    %43 = vector.extract_strided_slice %42 {offsets = [0, 0], sizes = [2, 128], strides = [1, 1]} : vector<2x384xf32> to vector<2x128xf32>
    %44 = vector.extract_strided_slice %42 {offsets = [0, 128], sizes = [2, 128], strides = [1, 1]} : vector<2x384xf32> to vector<2x128xf32>
    %45 = vector.extract_strided_slice %42 {offsets = [0, 256], sizes = [2, 128], strides = [1, 1]} : vector<2x384xf32> to vector<2x128xf32>
    %46 = vector.extract_strided_slice %36 {offsets = [0, 384], sizes = [2, 128], strides = [1, 1]} : vector<2x512xf32> to vector<2x128xf32>
    %47 = math.tanh %46 : vector<2x128xf32>
    %48 = arith.mulf %44, %30 : vector<2x128xf32>
    %49 = arith.mulf %43, %47 : vector<2x128xf32>
    %50 = arith.addf %48, %49 : vector<2x128xf32>
    %51 = math.tanh %50 : vector<2x128xf32>
    %52 = arith.mulf %45, %51 : vector<2x128xf32>
    %53 = vector.extract_strided_slice %10 {offsets = [0, 2, 0], sizes = [2, 1, 512], strides = [1, 1, 1]} : vector<2x8x512xf32> to vector<2x1x512xf32>
    %54 = vector.shape_cast %53 : vector<2x1x512xf32> to vector<2x512xf32>
    %cst_13 = arith.constant dense<0.000000e+00> : vector<2x512xf32>
    %55 = tpu.matmul %52, %2, %cst_13 {dimension_numbers = #tpu.dot_dimension_numbers<[1], [0], [0], [1], [0, 0, 1, 1], [], []>} : vector<2x128xf32>, vector<128x512xf32>, vector<2x512xf32> -> vector<2x512xf32>
    %56 = arith.addf %54, %55 : vector<2x512xf32>
    %57 = vector.extract_strided_slice %56 {offsets = [0, 0], sizes = [2, 384], strides = [1, 1]} : vector<2x512xf32> to vector<2x384xf32>
    %58 = arith.negf %57 : vector<2x384xf32>
    %59 = math.exp %58 : vector<2x384xf32>
    %cst_14 = arith.constant 1.000000e+00 : f32
    %60 = vector.broadcast %cst_14 : f32 to vector<2x384xf32>
    %61 = arith.addf %60, %59 : vector<2x384xf32>
    %62 = arith.divf %60, %61 : vector<2x384xf32>
    %63 = vector.extract_strided_slice %62 {offsets = [0, 0], sizes = [2, 128], strides = [1, 1]} : vector<2x384xf32> to vector<2x128xf32>
    %64 = vector.extract_strided_slice %62 {offsets = [0, 128], sizes = [2, 128], strides = [1, 1]} : vector<2x384xf32> to vector<2x128xf32>
    %65 = vector.extract_strided_slice %62 {offsets = [0, 256], sizes = [2, 128], strides = [1, 1]} : vector<2x384xf32> to vector<2x128xf32>
    %66 = vector.extract_strided_slice %56 {offsets = [0, 384], sizes = [2, 128], strides = [1, 1]} : vector<2x512xf32> to vector<2x128xf32>
    %67 = math.tanh %66 : vector<2x128xf32>
    %68 = arith.mulf %64, %50 : vector<2x128xf32>
    %69 = arith.mulf %63, %67 : vector<2x128xf32>
    %70 = arith.addf %68, %69 : vector<2x128xf32>
    %71 = math.tanh %70 : vector<2x128xf32>
    %72 = arith.mulf %65, %71 : vector<2x128xf32>
    %73 = vector.extract_strided_slice %10 {offsets = [0, 3, 0], sizes = [2, 1, 512], strides = [1, 1, 1]} : vector<2x8x512xf32> to vector<2x1x512xf32>
    %74 = vector.shape_cast %73 : vector<2x1x512xf32> to vector<2x512xf32>
    %cst_15 = arith.constant dense<0.000000e+00> : vector<2x512xf32>
    %75 = tpu.matmul %72, %2, %cst_15 {dimension_numbers = #tpu.dot_dimension_numbers<[1], [0], [0], [1], [0, 0, 1, 1], [], []>} : vector<2x128xf32>, vector<128x512xf32>, vector<2x512xf32> -> vector<2x512xf32>
    %76 = arith.addf %74, %75 : vector<2x512xf32>
    %77 = vector.extract_strided_slice %76 {offsets = [0, 0], sizes = [2, 384], strides = [1, 1]} : vector<2x512xf32> to vector<2x384xf32>
    %78 = arith.negf %77 : vector<2x384xf32>
    %79 = math.exp %78 : vector<2x384xf32>
    %cst_16 = arith.constant 1.000000e+00 : f32
    %80 = vector.broadcast %cst_16 : f32 to vector<2x384xf32>
    %81 = arith.addf %80, %79 : vector<2x384xf32>
    %82 = arith.divf %80, %81 : vector<2x384xf32>
    %83 = vector.extract_strided_slice %82 {offsets = [0, 0], sizes = [2, 128], strides = [1, 1]} : vector<2x384xf32> to vector<2x128xf32>
    %84 = vector.extract_strided_slice %82 {offsets = [0, 128], sizes = [2, 128], strides = [1, 1]} : vector<2x384xf32> to vector<2x128xf32>
    %85 = vector.extract_strided_slice %82 {offsets = [0, 256], sizes = [2, 128], strides = [1, 1]} : vector<2x384xf32> to vector<2x128xf32>
    %86 = vector.extract_strided_slice %76 {offsets = [0, 384], sizes = [2, 128], strides = [1, 1]} : vector<2x512xf32> to vector<2x128xf32>
    %87 = math.tanh %86 : vector<2x128xf32>
    %88 = arith.mulf %84, %70 : vector<2x128xf32>
    %89 = arith.mulf %83, %87 : vector<2x128xf32>
    %90 = arith.addf %88, %89 : vector<2x128xf32>
    %91 = math.tanh %90 : vector<2x128xf32>
    %92 = arith.mulf %85, %91 : vector<2x128xf32>
    %93 = vector.extract_strided_slice %10 {offsets = [0, 4, 0], sizes = [2, 1, 512], strides = [1, 1, 1]} : vector<2x8x512xf32> to vector<2x1x512xf32>
    %94 = vector.shape_cast %93 : vector<2x1x512xf32> to vector<2x512xf32>
    %cst_17 = arith.constant dense<0.000000e+00> : vector<2x512xf32>
    %95 = tpu.matmul %92, %2, %cst_17 {dimension_numbers = #tpu.dot_dimension_numbers<[1], [0], [0], [1], [0, 0, 1, 1], [], []>} : vector<2x128xf32>, vector<128x512xf32>, vector<2x512xf32> -> vector<2x512xf32>
    %96 = arith.addf %94, %95 : vector<2x512xf32>
    %97 = vector.extract_strided_slice %96 {offsets = [0, 0], sizes = [2, 384], strides = [1, 1]} : vector<2x512xf32> to vector<2x384xf32>
    %98 = arith.negf %97 : vector<2x384xf32>
    %99 = math.exp %98 : vector<2x384xf32>
    %cst_18 = arith.constant 1.000000e+00 : f32
    %100 = vector.broadcast %cst_18 : f32 to vector<2x384xf32>
    %101 = arith.addf %100, %99 : vector<2x384xf32>
    %102 = arith.divf %100, %101 : vector<2x384xf32>
    %103 = vector.extract_strided_slice %102 {offsets = [0, 0], sizes = [2, 128], strides = [1, 1]} : vector<2x384xf32> to vector<2x128xf32>
    %104 = vector.extract_strided_slice %102 {offsets = [0, 128], sizes = [2, 128], strides = [1, 1]} : vector<2x384xf32> to vector<2x128xf32>
    %105 = vector.extract_strided_slice %102 {offsets = [0, 256], sizes = [2, 128], strides = [1, 1]} : vector<2x384xf32> to vector<2x128xf32>
    %106 = vector.extract_strided_slice %96 {offsets = [0, 384], sizes = [2, 128], strides = [1, 1]} : vector<2x512xf32> to vector<2x128xf32>
    %107 = math.tanh %106 : vector<2x128xf32>
    %108 = arith.mulf %104, %90 : vector<2x128xf32>
    %109 = arith.mulf %103, %107 : vector<2x128xf32>
    %110 = arith.addf %108, %109 : vector<2x128xf32>
    %111 = math.tanh %110 : vector<2x128xf32>
    %112 = arith.mulf %105, %111 : vector<2x128xf32>
    %113 = vector.extract_strided_slice %10 {offsets = [0, 5, 0], sizes = [2, 1, 512], strides = [1, 1, 1]} : vector<2x8x512xf32> to vector<2x1x512xf32>
    %114 = vector.shape_cast %113 : vector<2x1x512xf32> to vector<2x512xf32>
    %cst_19 = arith.constant dense<0.000000e+00> : vector<2x512xf32>
    %115 = tpu.matmul %112, %2, %cst_19 {dimension_numbers = #tpu.dot_dimension_numbers<[1], [0], [0], [1], [0, 0, 1, 1], [], []>} : vector<2x128xf32>, vector<128x512xf32>, vector<2x512xf32> -> vector<2x512xf32>
    %116 = arith.addf %114, %115 : vector<2x512xf32>
    %117 = vector.extract_strided_slice %116 {offsets = [0, 0], sizes = [2, 384], strides = [1, 1]} : vector<2x512xf32> to vector<2x384xf32>
    %118 = arith.negf %117 : vector<2x384xf32>
    %119 = math.exp %118 : vector<2x384xf32>
    %cst_20 = arith.constant 1.000000e+00 : f32
    %120 = vector.broadcast %cst_20 : f32 to vector<2x384xf32>
    %121 = arith.addf %120, %119 : vector<2x384xf32>
    %122 = arith.divf %120, %121 : vector<2x384xf32>
    %123 = vector.extract_strided_slice %122 {offsets = [0, 0], sizes = [2, 128], strides = [1, 1]} : vector<2x384xf32> to vector<2x128xf32>
    %124 = vector.extract_strided_slice %122 {offsets = [0, 128], sizes = [2, 128], strides = [1, 1]} : vector<2x384xf32> to vector<2x128xf32>
    %125 = vector.extract_strided_slice %122 {offsets = [0, 256], sizes = [2, 128], strides = [1, 1]} : vector<2x384xf32> to vector<2x128xf32>
    %126 = vector.extract_strided_slice %116 {offsets = [0, 384], sizes = [2, 128], strides = [1, 1]} : vector<2x512xf32> to vector<2x128xf32>
    %127 = math.tanh %126 : vector<2x128xf32>
    %128 = arith.mulf %124, %110 : vector<2x128xf32>
    %129 = arith.mulf %123, %127 : vector<2x128xf32>
    %130 = arith.addf %128, %129 : vector<2x128xf32>
    %131 = math.tanh %130 : vector<2x128xf32>
    %132 = arith.mulf %125, %131 : vector<2x128xf32>
    %133 = vector.extract_strided_slice %10 {offsets = [0, 6, 0], sizes = [2, 1, 512], strides = [1, 1, 1]} : vector<2x8x512xf32> to vector<2x1x512xf32>
    %134 = vector.shape_cast %133 : vector<2x1x512xf32> to vector<2x512xf32>
    %cst_21 = arith.constant dense<0.000000e+00> : vector<2x512xf32>
    %135 = tpu.matmul %132, %2, %cst_21 {dimension_numbers = #tpu.dot_dimension_numbers<[1], [0], [0], [1], [0, 0, 1, 1], [], []>} : vector<2x128xf32>, vector<128x512xf32>, vector<2x512xf32> -> vector<2x512xf32>
    %136 = arith.addf %134, %135 : vector<2x512xf32>
    %137 = vector.extract_strided_slice %136 {offsets = [0, 0], sizes = [2, 384], strides = [1, 1]} : vector<2x512xf32> to vector<2x384xf32>
    %138 = arith.negf %137 : vector<2x384xf32>
    %139 = math.exp %138 : vector<2x384xf32>
    %cst_22 = arith.constant 1.000000e+00 : f32
    %140 = vector.broadcast %cst_22 : f32 to vector<2x384xf32>
    %141 = arith.addf %140, %139 : vector<2x384xf32>
    %142 = arith.divf %140, %141 : vector<2x384xf32>
    %143 = vector.extract_strided_slice %142 {offsets = [0, 0], sizes = [2, 128], strides = [1, 1]} : vector<2x384xf32> to vector<2x128xf32>
    %144 = vector.extract_strided_slice %142 {offsets = [0, 128], sizes = [2, 128], strides = [1, 1]} : vector<2x384xf32> to vector<2x128xf32>
    %145 = vector.extract_strided_slice %142 {offsets = [0, 256], sizes = [2, 128], strides = [1, 1]} : vector<2x384xf32> to vector<2x128xf32>
    %146 = vector.extract_strided_slice %136 {offsets = [0, 384], sizes = [2, 128], strides = [1, 1]} : vector<2x512xf32> to vector<2x128xf32>
    %147 = math.tanh %146 : vector<2x128xf32>
    %148 = arith.mulf %144, %130 : vector<2x128xf32>
    %149 = arith.mulf %143, %147 : vector<2x128xf32>
    %150 = arith.addf %148, %149 : vector<2x128xf32>
    %151 = math.tanh %150 : vector<2x128xf32>
    %152 = arith.mulf %145, %151 : vector<2x128xf32>
    %153 = vector.extract_strided_slice %10 {offsets = [0, 7, 0], sizes = [2, 1, 512], strides = [1, 1, 1]} : vector<2x8x512xf32> to vector<2x1x512xf32>
    %154 = vector.shape_cast %153 : vector<2x1x512xf32> to vector<2x512xf32>
    %cst_23 = arith.constant dense<0.000000e+00> : vector<2x512xf32>
    %155 = tpu.matmul %152, %2, %cst_23 {dimension_numbers = #tpu.dot_dimension_numbers<[1], [0], [0], [1], [0, 0, 1, 1], [], []>} : vector<2x128xf32>, vector<128x512xf32>, vector<2x512xf32> -> vector<2x512xf32>
    %156 = arith.addf %154, %155 : vector<2x512xf32>
    %157 = vector.extract_strided_slice %156 {offsets = [0, 0], sizes = [2, 384], strides = [1, 1]} : vector<2x512xf32> to vector<2x384xf32>
    %158 = arith.negf %157 : vector<2x384xf32>
    %159 = math.exp %158 : vector<2x384xf32>
    %cst_24 = arith.constant 1.000000e+00 : f32
    %160 = vector.broadcast %cst_24 : f32 to vector<2x384xf32>
    %161 = arith.addf %160, %159 : vector<2x384xf32>
    %162 = arith.divf %160, %161 : vector<2x384xf32>
    %163 = vector.extract_strided_slice %162 {offsets = [0, 0], sizes = [2, 128], strides = [1, 1]} : vector<2x384xf32> to vector<2x128xf32>
    %164 = vector.extract_strided_slice %162 {offsets = [0, 128], sizes = [2, 128], strides = [1, 1]} : vector<2x384xf32> to vector<2x128xf32>
    %165 = vector.extract_strided_slice %162 {offsets = [0, 256], sizes = [2, 128], strides = [1, 1]} : vector<2x384xf32> to vector<2x128xf32>
    %166 = vector.extract_strided_slice %156 {offsets = [0, 384], sizes = [2, 128], strides = [1, 1]} : vector<2x512xf32> to vector<2x128xf32>
    %167 = math.tanh %166 : vector<2x128xf32>
    %168 = arith.mulf %164, %150 : vector<2x128xf32>
    %169 = arith.mulf %163, %167 : vector<2x128xf32>
    %170 = arith.addf %168, %169 : vector<2x128xf32>
    %171 = math.tanh %170 : vector<2x128xf32>
    %172 = arith.mulf %165, %171 : vector<2x128xf32>
    %c0_25 = arith.constant 0 : index
    %c0_26 = arith.constant 0 : index
    %173 = vector.load %arg4[%c0_25, %c0_26] : memref<1x128xf32, #tpu.memory_space<vmem>>, vector<1x128xf32>
    %174 = vector.broadcast %173 : vector<1x128xf32> to vector<2x128xf32>
    %175 = arith.mulf %172, %174 : vector<2x128xf32>
    %cst_27 = arith.constant dense<0.000000e+00> : vector<2xf32>
    %176 = vector.multi_reduction <add>, %175, %cst_27 [1] : vector<2x128xf32> to vector<2xf32>
    %177 = vector.shape_cast %176 : vector<2xf32> to vector<2x1xf32>
    %c0_28 = arith.constant 0 : index
    %c0_29 = arith.constant 0 : index
    %178 = vector.load %arg5[%c0_28, %c0_29] : memref<1x1xf32, #tpu.memory_space<vmem>>, vector<1x1xf32>
    %179 = vector.broadcast %178 : vector<1x1xf32> to vector<2x1xf32>
    %180 = arith.addf %177, %179 : vector<2x1xf32>
    %c0_30 = arith.constant 0 : index
    %c0_31 = arith.constant 0 : index
    %181 = vector.load %arg6[%c0_30, %c0_31] : memref<2x1xf32, #tpu.memory_space<vmem>>, vector<2x1xf32>
    tpu.vector_store %arg6[%c0_30, %c0_31], %180 {strides = array<i32>} : memref<2x1xf32, #tpu.memory_space<vmem>>, vector<2x1xf32>,
    return
  }
}

</mosaic_0001>

<bundles_post_ra>
// kernel: lstm_model_forward.1
= control target key start
LH: loop header
LB: loop body
LE: loop exit
PB: predicated region body
PF: predicated region fallthrough
CT: control target
= control target key end

     0   :  { %s3439_s0 = inlined_call_operand.vmem [shape: f32[2,8,1], index: 0, kind: input, shape index: {}]   ;;  %s3440_s1 = inlined_call_operand.vmem [shape: f32[1,512], index: 1, kind: input, shape index: {}]   ;;  %s3441_s2 = inlined_call_operand.hbm [shape: f32[128,512], index: 2, kind: input, shape index: {}]   ;;  %s3442_s3 = inlined_call_operand.vmem [shape: f32[1,512], index: 3, kind: input, shape index: {}]   ;;  %s3443_s4 = inlined_call_operand.vmem [shape: f32[1,128], index: 4, kind: input, shape index: {}]   ;;  %s3444_s5 = inlined_call_operand.<no memory space> [shape: f32[1,1], index: 5, kind: input, shape index: {}]   ;;  %s3445_s6 = inlined_call_operand.vmem [shape: f32[2,1], index: 6, kind: output, shape index: {}]  }
   0x1   :  { %v11_v0 = vstv %s3444_s5 }
   0x2   :  { %12 = vst [vmem:[#allocation2] sm:$0x1] %v11_v0 }
   0x3   :  { %13 = vsyncpa [#allocation4], 0  ;;  %s2882_s23 = smov [#allocation3]   ;;  %s2858_s27 = scalar_lea.hbm %s3441_s2, 8192 }
   0x4   :  { %s23_s24 = sshll.u32 %s2882_s23, 4  ;;  %p2859_p0 = scmp.ne.s32.totalorder %s3441_s2, %s2858_s27  ;;  %s24_s24 = int_to_ptr.vmem [resolvable:$true] %s23_s24 }
   0x5   :  { %p2862_p1 = scmp.lt.u32.totalorder %s2858_s27, %s3441_s2 }
   0x7   :  { %p2864_p2 = pnand %p2862_p1, %p2859_p0 }
   0x9   :  { %2867 = shalt.err (!%p2864_p2)
}
   0xa   :  { %s2868_s5 = scalar_lea.vmem %s24_s24, 8192  ;;  %p2873_p4 = scmp.lt.s32.totalorder %s24_s24, %s24_s24 }
   0xb   :  { %p2869_p3 = scmp.ne.s32.totalorder %s24_s24, %s2868_s5  ;;  %p2874_p5 = scmp.lt.s32.totalorder %s2868_s5, %s2868_s5 }
   0xd   :  { %p2875_p6 = por %p2874_p5, %p2873_p4 }
   0xf   :  { %p2876_p7 = pnand %p2875_p6, %p2869_p3 }
  0x11   :  { %2879 = shalt.err (!%p2876_p7)
}
  0x12   :  { %s2883_s8 = smov 512   ;;  %s2884_s9 = smov 32  }
  0x13   :  { %29 = dma.hbm_to_vmem [thread:$0]  %s3441_s2, 8192, %s24_s24, [#allocation4], %s2883_s8, %s2883_s8, %s2884_s9  }
  0x14   :  { %2880 = dma.done.wait [#allocation4], 8192  }
  0x15   :  { %2881 = vsyncadd [#allocation4], 4294959104  ;;  %v3446_v1 = vmov 0.0   ;;  %v2886_v2 = vmov 0   ;;  %v43_v3 = vld [vmem:[#allocation3 + $0x8] sm:$0xff]  ;;  %v45_v5 = vld [vmem:[#allocation3 + $0x18] sm:$0xff] }
  0x16   :  { %239 = vmatprep.mubr.f32.mxu0 %v3446_v1  ;;  %310 = vmatprep.mubr.f32.mxu1 %v3446_v1  ;;  %v47_v4 = vld [vmem:[#allocation3 + $0x28] sm:$0xff]  ;;  %v49_v7 = vld [vmem:[#allocation3 + $0x38] sm:$0xff]  ;;  %v42_v8 = vld [vmem:[#allocation3] sm:$0xff]  ;;  %vm392_vm0 = vcmask 1041409   ;;  %vm2008_vm1 = vcmask 1047559   ;;  %vm2012_vm2 = vcmask 1040384  }
  0x17   :  { %2601 = vset.pattern.permute.xlu0 %v2886_v2  ;;  %v2939_v6 = vpack.c.bf16 %v47_v4, %v43_v3  ;;  %v46_v9 = vld [vmem:[#allocation3 + $0x20] sm:$0xff]  ;;  %v2941_v10 = vpack.c.bf16 %v49_v7, %v45_v5  ;;  %v44_v12 = vld [vmem:[#allocation3 + $0x10] sm:$0xff]  ;;  %v51_v14 = vld [vmem:[#allocation3 + $0x48] sm:$0xff]  ;;  %vm2025_vm3 = vcmask 7175   ;;  %vm2027_vm4 = vcmask 0  }
  0x18   :  { %v2943_v11 = vpack.c.bf16 %v46_v9, %v42_v8  ;;  %v48_v13 = vld [vmem:[#allocation3 + $0x30] sm:$0xff]  ;;  %v55_v16 = vld [vmem:[#allocation3 + $0x68] sm:$0xff]  ;;  %v53_v17 = vld [vmem:[#allocation3 + $0x58] sm:$0xff] }
  0x19   :  { %2085 = vmatprep.subr.bf16.mxu0 %v2939_v6  ;;  %v2946_v15 = vpack.c.bf16 %v48_v13, %v44_v12  ;;  %v57_v18 = vld [vmem:[#allocation3 + $0x78] sm:$0xff]  ;;  %2117 = vmatprep.subr.bf16.mxu1 %v2941_v10  ;;  %v2950_v19 = vpack.c.bf16 %v55_v16, %v51_v14  ;;  %v50_v21 = vld [vmem:[#allocation3 + $0x40] sm:$0xff]  ;;  %v52_v23 = vld [vmem:[#allocation3 + $0x50] sm:$0xff] }
  0x1a   :  { %2087 = vmatpush1.bf16.msra.mxu0 %v2943_v11  ;;  %v2952_v20 = vpack.c.bf16 %v57_v18, %v53_v17  ;;  %v54_v22 = vld [vmem:[#allocation3 + $0x60] sm:$0xff]  ;;  %v56_v25 = vld [vmem:[#allocation3 + $0x70] sm:$0xff]  ;;  %v59_v26 = vld [vmem:[#allocation3 + $0x88] sm:$0xff] }
  0x1b   :  { %2119 = vmatpush1.bf16.msra.mxu1 %v2946_v15  ;;  %v2955_v24 = vpack.c.bf16 %v54_v22, %v50_v21  ;;  %v63_v27 = vld [vmem:[#allocation3 + $0xa8] sm:$0xff]  ;;  %2089 = vmatprep.subr.bf16.mxu0 %v2950_v19  ;;  %v2959_v28 = vpack.c.bf16 %v56_v25, %v52_v23  ;;  %v61_v30 = vld [vmem:[#allocation3 + $0x98] sm:$0xff]  ;;  %v58_v32 = vld [vmem:[#allocation3 + $0x80] sm:$0xff] }
  0x1c   :  { %2121 = vmatprep.subr.bf16.mxu1 %v2952_v20  ;;  %v2961_v29 = vpack.c.bf16 %v63_v27, %v59_v26  ;;  %v65_v31 = vld [vmem:[#allocation3 + $0xb8] sm:$0xff]  ;;  %v62_v34 = vld [vmem:[#allocation3 + $0xa0] sm:$0xff]  ;;  %v60_v35 = vld [vmem:[#allocation3 + $0x90] sm:$0xff] }
  0x1d   :  { %v2963_v33 = vpack.c.bf16 %v65_v31, %v61_v30  ;;  %v64_v36 = vld [vmem:[#allocation3 + $0xb0] sm:$0xff]  ;;  %v2966_v37 = vpack.c.bf16 %v62_v34, %v58_v32  ;;  %v67_v38 = vld [vmem:[#allocation3 + $0xc8] sm:$0xff]  ;;  %v69_v40 = vld [vmem:[#allocation3 + $0xd8] sm:$0xff] }
  0x1e   :  { %2091 = vmatpush1.bf16.msra.mxu0 %v2955_v24  ;;  %v71_v39 = vld [vmem:[#allocation3 + $0xe8] sm:$0xff]  ;;  %v2970_v41 = vpack.c.bf16 %v64_v36, %v60_v35  ;;  %v73_v43 = vld [vmem:[#allocation3 + $0xf8] sm:$0xff]  ;;  %v66_v44 = vld [vmem:[#allocation3 + $0xc0] sm:$0xff] }
  0x1f   :  { %2123 = vmatpush1.bf16.msra.mxu1 %v2959_v28  ;;  %2093 = vmatprep.subr.bf16.mxu0 %v2961_v29  ;;  %v2972_v42 = vpack.c.bf16 %v71_v39, %v67_v38  ;;  %v70_v45 = vld [vmem:[#allocation3 + $0xe0] sm:$0xff]  ;;  %v2975_v46 = vpack.c.bf16 %v73_v43, %v69_v40  ;;  %v68_v47 = vld [vmem:[#allocation3 + $0xd0] sm:$0xff]  ;;  %v75_v49 = vld [vmem:[#allocation3 + $0x108] sm:$0xff] }
  0x20   :  { %2125 = vmatprep.subr.bf16.mxu1 %v2963_v33  ;;  %v72_v48 = vld [vmem:[#allocation3 + $0xf0] sm:$0xff]  ;;  %v79_v50 = vld [vmem:[#allocation3 + $0x128] sm:$0xff]  ;;  %v77_v51 = vld [vmem:[#allocation3 + $0x118] sm:$0xff]  ;;  %v2978_v53 = vpack.c.bf16 %v70_v45, %v66_v44 }
  0x21   :  { %v81_v52 = vld [vmem:[#allocation3 + $0x138] sm:$0xff]  ;;  %v2982_v54 = vpack.c.bf16 %v72_v48, %v68_v47  ;;  %v2984_v55 = vpack.c.bf16 %v79_v50, %v75_v49  ;;  %v74_v56 = vld [vmem:[#allocation3 + $0x100] sm:$0xff]  ;;  %v76_v58 = vld [vmem:[#allocation3 + $0x110] sm:$0xff] }
  0x22   :  { %2095 = vmatpush1.bf16.msra.mxu0 %v2966_v37  ;;  %v78_v57 = vld [vmem:[#allocation3 + $0x120] sm:$0xff]  ;;  %v2987_v59 = vpack.c.bf16 %v81_v52, %v77_v51  ;;  %v80_v60 = vld [vmem:[#allocation3 + $0x130] sm:$0xff]  ;;  %v83_v61 = vld [vmem:[#allocation3 + $0x148] sm:$0xff]  ;;  %v118_v52 = vlaneseq }
  0x23   :  { %2127 = vmatpush1.bf16.msra.mxu1 %v2970_v41  ;;  %2097 = vmatprep.subr.bf16.mxu0 %v2972_v42  ;;  %v87_v62 = vld [vmem:[#allocation3 + $0x168] sm:$0xff]  ;;  %v85_v63 = vld [vmem:[#allocation3 + $0x158] sm:$0xff]  ;;  %v2990_v2 = vpack.c.bf16 %v78_v57, %v74_v56  ;;  %v2994_v3 = vpack.c.bf16 %v80_v60, %v76_v58  ;;  %v82_v5 = vld [vmem:[#allocation3 + $0x140] sm:$0xff] }
  0x24   :  { %2129 = vmatprep.subr.bf16.mxu1 %v2975_v46  ;;  %v89_v0 = vld [vmem:[#allocation3 + $0x178] sm:$0xff]  ;;  %v2996_v4 = vpack.c.bf16 %v87_v62, %v83_v61  ;;  %v86_v7 = vld [vmem:[#allocation3 + $0x160] sm:$0xff]  ;;  %v84_v8 = vld [vmem:[#allocation3 + $0x150] sm:$0xff]  ;;  %v119_v56 = vshrl.u32 %v118_v52, 7 }
  0x25   :  { %v2999_v9 = vpack.c.bf16 %v89_v0, %v85_v63  ;;  %v88_v12 = vld [vmem:[#allocation3 + $0x170] sm:$0xff]  ;;  %v91_v13 = vld [vmem:[#allocation3 + $0x188] sm:$0xff]  ;;  %v93_v16 = vld [vmem:[#allocation3 + $0x198] sm:$0xff]  ;;  %v3002_v18 = vpack.c.bf16 %v86_v7, %v82_v5 }
  0x26   :  { %2099 = vmatpush1.bf16.msra.mxu0 %v2978_v53  ;;  %v95_v14 = vld [vmem:[#allocation3 + $0x1a8] sm:$0xff]  ;;  %v97_v17 = vld [vmem:[#allocation3 + $0x1b8] sm:$0xff]  ;;  %v90_v21 = vld [vmem:[#allocation3 + $0x180] sm:$0xff]  ;;  %v3006_v22 = vpack.c.bf16 %v88_v12, %v84_v8  ;;  %v120_v58 = vsub.s32 0, %v119_v56  ;;  %v124_v61 = vsub.s32 1, %v119_v56  ;;  %v128_v7 = vsub.s32 2, %v119_v56 }
  0x27   :  { %2131 = vmatpush1.bf16.msra.mxu1 %v2982_v54  ;;  %2101 = vmatprep.subr.bf16.mxu0 %v2984_v55  ;;  %v3008_v23 = vpack.c.bf16 %v95_v14, %v91_v13  ;;  %v94_v25 = vld [vmem:[#allocation3 + $0x1a0] sm:$0xff]  ;;  %v92_v26 = vld [vmem:[#allocation3 + $0x190] sm:$0xff]  ;;  %v3014_v30 = vpack.c.bf16 %v97_v17, %v93_v16  ;;  %v99_v32 = vld [vmem:[#allocation3 + $0x1c8] sm:$0xff] }
  0x28   :  { %2133 = vmatprep.subr.bf16.mxu1 %v2987_v59  ;;  %v40_v27 = vld [vmem:[%s3439_s0 + $0x8] sm:$0xff]  ;;  %v96_v31 = vld [vmem:[#allocation3 + $0x1b0] sm:$0xff]  ;;  %v101_v35 = vld [vmem:[#allocation3 + $0x1d8] sm:$0xff]  ;;  %v3020_v39 = vpack.c.bf16 %v94_v25, %v90_v21  ;;  %v132_v21 = vsub.s32 3, %v119_v56 }
  0x29   :  { %v103_v34 = vld [vmem:[#allocation3 + $0x1e8] sm:$0xff]  ;;  %114 = vperm.xlu0 %2601, %v40_v27   ;;  %v105_v36 = vld [vmem:[#allocation3 + $0x1f8] sm:$0xff]  ;;  %v3024_v40 = vpack.c.bf16 %v96_v31, %v92_v26  ;;  %v98_v44 = vld [vmem:[#allocation3 + $0x1c0] sm:$0xff] }
  0x2a   :  { %2103 = vmatpush1.bf16.msra.mxu0 %v2990_v2  ;;  %v39_v38 = vld [vmem:[%s3439_s0] sm:$0xff]  ;;  %v3026_v43 = vpack.c.bf16 %v103_v34, %v99_v32  ;;  %v3029_v47 = vpack.c.bf16 %v105_v36, %v101_v35  ;;  %v100_v48 = vld [vmem:[#allocation3 + $0x1d0] sm:$0xff] }
  0x2b   :  { %2135 = vmatpush1.bf16.msra.mxu1 %v2994_v3  ;;  %2105 = vmatprep.subr.bf16.mxu0 %v2996_v4  ;;  %v102_v45 = vld [vmem:[#allocation3 + $0x1e0] sm:$0xff]  ;;  %v104_v49 = vld [vmem:[#allocation3 + $0x1f0] sm:$0xff] }
  0x2c   :  { %2137 = vmatprep.subr.bf16.mxu1 %v2999_v9  ;;  %v3032_v50 = vpack.c.bf16 %v102_v45, %v98_v44  ;;  %v3036_v51 = vpack.c.bf16 %v104_v49, %v100_v48  ;;  %v41_v60 = vld [vmem:[%s3440_s1] sm:$0xf] }
  0x2d   :  { %109 = vperm.xlu0 %2601, %v39_v38   ;;  %v121_v62 = vrot.slane %v41_v60, %v120_v58  ;;  %v106_v63 = vld [vmem:[%s3442_s3] sm:$0xf]  ;;  %v125_v0 = vrot.slane %v41_v60, %v124_v61  ;;  %v129_v16 = vrot.slane %v41_v60, %v128_v7  ;;  %v133_v38 = vrot.slane %v41_v60, %v132_v21 }
  0x2e   :  { %2107 = vmatpush1.bf16.msra.mxu0 %v3002_v18  ;;  %v150_v8 = vrot.slane %v106_v63, %v120_v58  ;;  %v154_v13 = vrot.slane %v106_v63, %v124_v61  ;;  %v158_v31 = vrot.slane %v106_v63, %v128_v7 }
  0x2f   :  { %2139 = vmatpush1.bf16.msra.mxu1 %v3006_v22  ;;  %2109 = vmatprep.subr.bf16.mxu0 %v3008_v23 }
  0x30   :  { %2141 = vmatprep.subr.bf16.mxu1 %v3014_v30 }
  0x32   :  { %2111 = vmatpush1.bf16.msra.mxu0 %v3020_v39 }
  0x33   :  { %2143 = vmatpush1.bf16.msra.mxu1 %v3024_v40  ;;  %2113 = vmatprep.subr.bf16.mxu0 %v3026_v43 }
  0x34   :  { %2145 = vmatprep.subr.bf16.mxu1 %v3029_v47 }
  0x36   :  { %2115 = vmatpush1.bf16.msra.mxu0 %v3032_v50 }
  0x37   :  { %2147 = vmatpush1.bf16.msra.mxu1 %v3036_v51  ;;  %2149 = vmatprep.subr.bf16.mxu0 %v2939_v6 }
  0x38   :  { %2181 = vmatprep.subr.bf16.mxu1 %v2941_v10 }
  0x39   :  { %240 = vmatmul.mubr.f32.vlgmr.msra.gmra.mrb[0].mxu0 %v3446_v1 }
  0x3a   :  { %311 = vmatmul.mubr.f32.vlgmr.msra.gmra.mrb[0].mxu1 %v3446_v1  ;;  %2151 = vmatpush1.bf16.msra.mxu0 %v2943_v11 }
  0x3b   :  { %2183 = vmatpush1.bf16.msra.mxu1 %v2946_v15  ;;  %2153 = vmatprep.subr.bf16.mxu0 %v2950_v19 }
  0x3c   :  { %2185 = vmatprep.subr.bf16.mxu1 %v2952_v20  ;;  %459 = vmatprep.mubr.f32.mxu0 %v3446_v1 }
  0x3d   :  { %530 = vmatprep.mubr.f32.mxu1 %v3446_v1 }
  0x3e   :  { %2155 = vmatpush1.bf16.msra.mxu0 %v2955_v24 }
  0x3f   :  { %2187 = vmatpush1.bf16.msra.mxu1 %v2959_v28  ;;  %2157 = vmatprep.subr.bf16.mxu0 %v2961_v29 }
  0x40   :  { %2189 = vmatprep.subr.bf16.mxu1 %v2963_v33 }
  0x42   :  { %2159 = vmatpush1.bf16.msra.mxu0 %v2966_v37 }
  0x43   :  { %2191 = vmatpush1.bf16.msra.mxu1 %v2970_v41  ;;  %2161 = vmatprep.subr.bf16.mxu0 %v2972_v42 }
  0x44   :  { %2193 = vmatprep.subr.bf16.mxu1 %v2975_v46 }
  0x46   :  { %2163 = vmatpush1.bf16.msra.mxu0 %v2978_v53 }
  0x47   :  { %2195 = vmatpush1.bf16.msra.mxu1 %v2982_v54  ;;  %2165 = vmatprep.subr.bf16.mxu0 %v2984_v55 }
  0x48   :  { %2197 = vmatprep.subr.bf16.mxu1 %v2987_v59 }
  0x4a   :  { %2167 = vmatpush1.bf16.msra.mxu0 %v2990_v2 }
  0x4b   :  { %2199 = vmatpush1.bf16.msra.mxu1 %v2994_v3  ;;  %2169 = vmatprep.subr.bf16.mxu0 %v2996_v4 }
  0x4c   :  { %2201 = vmatprep.subr.bf16.mxu1 %v2999_v9 }
  0x4e   :  { %2171 = vmatpush1.bf16.msra.mxu0 %v3002_v18 }
  0x4f   :  { %2203 = vmatpush1.bf16.msra.mxu1 %v3006_v22  ;;  %2173 = vmatprep.subr.bf16.mxu0 %v3008_v23 }
  0x50   :  { %2205 = vmatprep.subr.bf16.mxu1 %v3014_v30 }
  0x52   :  { %2175 = vmatpush1.bf16.msra.mxu0 %v3020_v39 }
  0x53   :  { %2207 = vmatpush1.bf16.msra.mxu1 %v3024_v40  ;;  %2177 = vmatprep.subr.bf16.mxu0 %v3026_v43 }
  0x54   :  { %2209 = vmatprep.subr.bf16.mxu1 %v3029_v47 }
  0x56   :  { %2179 = vmatpush1.bf16.msra.mxu0 %v3032_v50 }
  0x57   :  { %2211 = vmatpush1.bf16.msra.mxu1 %v3036_v51  ;;  %2213 = vmatprep.subr.bf16.mxu0 %v2939_v6 }
  0x58   :  { %2245 = vmatprep.subr.bf16.mxu1 %v2941_v10 }
  0xa8   :  { %v115_v57 = vpop.permute.xlu0 %114 }
  0xa9   :  { %v142_v17 = vmul.f32 %v121_v62, %v115_v57  ;;  %v143_v26 = vmul.f32 %v125_v0, %v115_v57  ;;  %v144_v35 = vmul.f32 %v129_v16, %v115_v57 }
  0xab   :  { %v3089_v32 = vadd.f32 %v150_v8, %v142_v17  ;;  %v3092_v52 = vadd.f32 %v154_v13, %v143_v26 }
  0xac   :  { %v110_v5 = vpop.permute.xlu0 %109 }
  0xad   :  { %v138_v12 = vmul.f32 %v121_v62, %v110_v5  ;;  %v139_v14 = vmul.f32 %v125_v0, %v110_v5  ;;  %v140_v34 = vmul.f32 %v129_v16, %v110_v5  ;;  %v141_v16 = vmul.f32 %v133_v38, %v110_v5 }
  0xaf   :  { %v3085_v25 = vadd.f32 %v150_v8, %v138_v12  ;;  %v3087_v27 = vadd.f32 %v154_v13, %v139_v14  ;;  %v3095_v62 = vadd.f32 %v158_v31, %v140_v34  ;;  %v162_v8 = vrot.slane %v106_v63, %v132_v21 }
  0xb0   :  { %v3098_v12 = vadd.f32 %v158_v31, %v144_v35 }
  0xb1   :  { %v3103_v1 = vadd.f32 %v162_v8, %v141_v16 }
 0x10c   :  { %v241_v36 = vpop.f32.mrb[0].mxu0 }
 0x10d   :  { %v321_v44 = vrot.slane %v241_v36, 1  ;;  %v333_v45 = vadd.f32 %v241_v36, %v3085_v25  ;;  %v312_v48 = vpop.f32.mrb[0].mxu1  ;;  %v243_v49 = vpop.f32.mrb[1].mxu0 }
 0x10e   :  { %v322_v56 = vrot.slane %v243_v49, 1  ;;  %v334_v58 = vadd.f32 %v243_v49, %v3087_v27  ;;  %v314_v61 = vpop.f32.mrb[1].mxu1  ;;  %v323_v60 = vrot.slane %v312_v48, 1  ;;  %v335_v36 = vadd.f32 %v312_v48, %v3095_v62 }
 0x10f   :  { %v337_v0 = vadd.f32 %v321_v44, %v3089_v32  ;;  %v2034_v7 = vmul.f32 -1.442695, %v333_v45  ;;  %v145_v49 = vmul.f32 %v133_v38, %v115_v57  ;;  %v324_v21 = vrot.slane %v314_v61, 1 }
 0x110   :  { %v338_v14 = vadd.f32 %v322_v56, %v3092_v52  ;;  %v2035_v13 = vmul.f32 -1.442695, %v334_v58  ;;  %v339_v34 = vadd.f32 %v323_v60, %v3098_v12  ;;  %v2036_v63 = vmul.f32 -1.442695, %v335_v36 }
 0x111   :  { %2602 = vpow2.f32 %v2034_v7  ;;  %v2037_v17 = vmul.f32 -1.442695, %v337_v0  ;;  %v3105_v35 = vadd.f32 %v162_v8, %v145_v49  ;;  %v336_v5 = vadd.f32 %v314_v61, %v3103_v1 }
 0x112   :  { %v2038_v26 = vmul.f32 -1.442695, %v338_v14  ;;  %v2039_v31 = vmul.f32 -1.442695, %v339_v34 }
 0x113   :  { %2604 = vpow2.f32 %v2037_v17  ;;  %v340_v45 = vadd.f32 %v324_v21, %v3105_v35 }
 0x114   :  { %2606 = vpow2.f32 %v2035_v13 }
 0x115   :  { %2608 = vpow2.f32 %v2038_v26 }
 0x116   :  { %2610 = vpow2.f32 %v2036_v63 }
 0x117   :  { %2612 = vpow2.f32 %v2039_v31 }
 0x118   :  { %2614 = vtanh.f32 %v336_v5 }
 0x11b   :  { %v2603_v44 = vpop.eup %2602 }
 0x11c   :  { %v359_v56 = vadd.f32 1.0, %v2603_v44 }
 0x11d   :  { %v2605_v48 = vpop.eup %2604 }
 0x11e   :  { %v362_v57 = vadd.f32 1.0, %v2605_v48  ;;  %2616 = vrcp.f32 %v359_v56  ;;  %v2607_v38 = vpop.eup %2606 }
 0x11f   :  { %2618 = vtanh.f32 %v340_v45  ;;  %v2609_v58 = vpop.eup %2608  ;;  %v360_v0 = vadd.f32 1.0, %v2607_v38 }
 0x120   :  { %2620 = vrcp.f32 %v362_v57  ;;  %v363_v7 = vadd.f32 1.0, %v2609_v58  ;;  %v2611_v8 = vpop.eup %2610 }
 0x121   :  { %2622 = vrcp.f32 %v360_v0  ;;  %v2613_v61 = vpop.eup %2612  ;;  %v361_v26 = vadd.f32 1.0, %v2611_v8  ;;  %v3448_v8 = vmov 0.0  }
 0x122   :  { %2624 = vrcp.f32 %v363_v7  ;;  %v2615_v60 = vpop.eup %2614  ;;  %v364_v49 = vadd.f32 1.0, %v2613_v61 }
 0x123   :  { %2626 = vrcp.f32 %v361_v26 }
 0x124   :  { %2628 = vrcp.f32 %v364_v49 }
 0x128   :  { %v2617_v14 = vpop.eup %2616 }
 0x129   :  { %v2619_v16 = vpop.eup %2618  ;;  %v381_v17 = vmul.f32 %v2617_v14, %v2615_v60 }
 0x12a   :  { %v2621_v13 = vpop.eup %2620 }
 0x12b   :  { %v382_v36 = vmul.f32 %v2621_v13, %v2619_v16  ;;  %v2623_v34 = vpop.eup %2622 }
 0x12c   :  { %v2625_v63 = vpop.eup %2624  ;;  %v379_v21 = vmul.f32 0.0, %v2623_v34 }
 0x12d   :  { %v380_v31 = vmul.f32 0.0, %v2625_v63  ;;  %v2627_v45 = vpop.eup %2626 }
 0x12e   :  { %v3109_v5 = vadd.f32 %v381_v17, %v379_v21  ;;  %v2629_v56 = vpop.eup %2628 }
 0x12f   :  { %v3111_v44 = vadd.f32 %v382_v36, %v380_v31 }
 0x130   :  { %2630 = vtanh.f32 %v3109_v5 }
 0x131   :  { %2632 = vtanh.f32 %v3111_v44 }
 0x13a   :  { %v2631_v48 = vpop.eup %2630 }
 0x13b   :  { %v2633_v57 = vpop.eup %2632  ;;  %v387_v38 = vmul.f32 %v2631_v48, %v2627_v45 }
 0x13c   :  { %v388_v58 = vmul.f32 %v2633_v57, %v2629_v56 }
 0x13e   :  { %v391_v0 = vrot.slane %v388_v58, 7 }
 0x140   :  { %v393_v7 = vsel %vm392_vm0, %v391_v0, %v387_v38 }
 0x141   :  { %460 = vmatmul.mubr.f32.vlgmr.msra.gmra.mrb[2].mxu0 %v393_v7  ;;  %531 = vmatmul.mubr.f32.vlgmr.msra.gmra.mrb[2].mxu1 %v393_v7 }
 0x142   :  { %2215 = vmatpush1.bf16.msra.mxu0 %v2943_v11  ;;  %2247 = vmatpush1.bf16.msra.mxu1 %v2946_v15 }
 0x143   :  { %2217 = vmatprep.subr.bf16.mxu0 %v2950_v19  ;;  %2249 = vmatprep.subr.bf16.mxu1 %v2952_v20 }
 0x144   :  { %684 = vmatprep.mubr.f32.mxu0 %v3448_v8  ;;  %755 = vmatprep.mubr.f32.mxu1 %v3448_v8 }
 0x146   :  { %2219 = vmatpush1.bf16.msra.mxu0 %v2955_v24  ;;  %2251 = vmatpush1.bf16.msra.mxu1 %v2959_v28 }
 0x147   :  { %2221 = vmatprep.subr.bf16.mxu0 %v2961_v29  ;;  %2253 = vmatprep.subr.bf16.mxu1 %v2963_v33 }
 0x14a   :  { %2223 = vmatpush1.bf16.msra.mxu0 %v2966_v37  ;;  %2255 = vmatpush1.bf16.msra.mxu1 %v2970_v41 }
 0x14b   :  { %2225 = vmatprep.subr.bf16.mxu0 %v2972_v42  ;;  %2257 = vmatprep.subr.bf16.mxu1 %v2975_v46 }
 0x14e   :  { %2227 = vmatpush1.bf16.msra.mxu0 %v2978_v53  ;;  %2259 = vmatpush1.bf16.msra.mxu1 %v2982_v54 }
 0x14f   :  { %2229 = vmatprep.subr.bf16.mxu0 %v2984_v55  ;;  %2261 = vmatprep.subr.bf16.mxu1 %v2987_v59 }
 0x152   :  { %2231 = vmatpush1.bf16.msra.mxu0 %v2990_v2  ;;  %2263 = vmatpush1.bf16.msra.mxu1 %v2994_v3 }
 0x153   :  { %2233 = vmatprep.subr.bf16.mxu0 %v2996_v4  ;;  %2265 = vmatprep.subr.bf16.mxu1 %v2999_v9 }
 0x156   :  { %2235 = vmatpush1.bf16.msra.mxu0 %v3002_v18  ;;  %2267 = vmatpush1.bf16.msra.mxu1 %v3006_v22 }
 0x157   :  { %2237 = vmatprep.subr.bf16.mxu0 %v3008_v23  ;;  %2269 = vmatprep.subr.bf16.mxu1 %v3014_v30 }
 0x15a   :  { %2239 = vmatpush1.bf16.msra.mxu0 %v3020_v39  ;;  %2271 = vmatpush1.bf16.msra.mxu1 %v3024_v40 }
 0x15b   :  { %2241 = vmatprep.subr.bf16.mxu0 %v3026_v43  ;;  %2273 = vmatprep.subr.bf16.mxu1 %v3029_v47 }
 0x15e   :  { %2243 = vmatpush1.bf16.msra.mxu0 %v3032_v50  ;;  %2275 = vmatpush1.bf16.msra.mxu1 %v3036_v51 }
 0x15f   :  { %2277 = vmatprep.subr.bf16.mxu0 %v2939_v6  ;;  %2309 = vmatprep.subr.bf16.mxu1 %v2941_v10 }
 0x214   :  { %v461_v61 = vpop.f32.mrb[2].mxu0  ;;  %v532_v60 = vpop.f32.mrb[2].mxu1 }
 0x215   :  { %v541_v14 = vrot.slane %v461_v61, 7  ;;  %v557_v16 = vadd.f32 %v461_v61, %v3089_v32  ;;  %v463_v17 = vpop.f32.mrb[3].mxu0  ;;  %v534_v13 = vpop.f32.mrb[3].mxu1  ;;  %v543_v31 = vrot.slane %v532_v60, 7  ;;  %v559_v48 = vadd.f32 %v532_v60, %v3098_v12 }
 0x216   :  { %v542_v26 = vrot.slane %v463_v17, 7  ;;  %v558_v36 = vadd.f32 %v463_v17, %v3092_v52  ;;  %v544_v38 = vrot.slane %v534_v13, 7  ;;  %v560_v58 = vadd.f32 %v534_v13, %v3105_v35 }
 0x217   :  { %v553_v34 = vadd.f32 %v541_v14, %v3085_v25  ;;  %v2043_v49 = vmul.f32 -1.442695, %v557_v16  ;;  %v555_v57 = vadd.f32 %v543_v31, %v3095_v62  ;;  %v2045_v0 = vmul.f32 -1.442695, %v559_v48 }
 0x218   :  { %v554_v63 = vadd.f32 %v542_v26, %v3087_v27  ;;  %v2044_v56 = vmul.f32 -1.442695, %v558_v36  ;;  %v556_v14 = vadd.f32 %v544_v38, %v3103_v1 }
 0x219   :  { %v2040_v21 = vmul.f32 -1.442695, %v553_v34  ;;  %2634 = vpow2.f32 %v2043_v49  ;;  %v2042_v7 = vmul.f32 -1.442695, %v555_v57  ;;  %v601_v57 = vrot.slane %v3109_v5, 7 }
 0x21a   :  { %v2041_v45 = vmul.f32 -1.442695, %v554_v63 }
 0x21b   :  { %2636 = vpow2.f32 %v2040_v21 }
 0x21c   :  { %2638 = vpow2.f32 %v2041_v45 }
 0x21d   :  { %2640 = vpow2.f32 %v2044_v56 }
 0x21e   :  { %2642 = vtanh.f32 %v560_v58 }
 0x21f   :  { %2644 = vpow2.f32 %v2045_v0 }
 0x220   :  { %2646 = vpow2.f32 %v2042_v7 }
 0x223   :  { %v2635_v61 = vpop.eup %2634 }
 0x224   :  { %v582_v16 = vadd.f32 1.0, %v2635_v61  ;;  %v602_v61 = vrot.slane %v3111_v44, 7 }
 0x225   :  { %v2637_v17 = vpop.eup %2636 }
 0x226   :  { %v579_v26 = vadd.f32 1.0, %v2637_v17  ;;  %2648 = vrcp.f32 %v582_v16  ;;  %v2639_v60 = vpop.eup %2638 }
 0x227   :  { %2650 = vtanh.f32 %v556_v14  ;;  %v2641_v36 = vpop.eup %2640  ;;  %v580_v34 = vadd.f32 1.0, %v2639_v60 }
 0x228   :  { %2652 = vrcp.f32 %v579_v26  ;;  %v583_v49 = vadd.f32 1.0, %v2641_v36  ;;  %v2643_v13 = vpop.eup %2642 }
 0x229   :  { %2654 = vrcp.f32 %v580_v34  ;;  %v2645_v63 = vpop.eup %2644 }
 0x22a   :  { %2656 = vrcp.f32 %v583_v49  ;;  %v2647_v21 = vpop.eup %2646  ;;  %v584_v38 = vadd.f32 1.0, %v2645_v63 }
 0x22b   :  { %v581_v7 = vadd.f32 1.0, %v2647_v21 }
 0x22c   :  { %2658 = vrcp.f32 %v584_v38 }
 0x22d   :  { %2660 = vrcp.f32 %v581_v7 }
 0x230   :  { %v2649_v31 = vpop.eup %2648 }
 0x231   :  { %v2651_v45 = vpop.eup %2650  ;;  %v608_v56 = vmul.f32 %v2649_v31, %v2643_v13 }
 0x232   :  { %v2653_v48 = vpop.eup %2652 }
 0x233   :  { %v607_v58 = vmul.f32 %v2653_v48, %v2651_v45  ;;  %v2655_v0 = vpop.eup %2654 }
 0x234   :  { %v2657_v14 = vpop.eup %2656  ;;  %v605_v16 = vmul.f32 %v2655_v0, %v601_v57 }
 0x235   :  { %v606_v17 = vmul.f32 %v2657_v14, %v602_v61 }
 0x236   :  { %v3160_v26 = vadd.f32 %v607_v58, %v605_v16  ;;  %v2659_v5 = vpop.eup %2658 }
 0x237   :  { %v3162_v60 = vadd.f32 %v608_v56, %v606_v17  ;;  %v2661_v36 = vpop.eup %2660 }
 0x238   :  { %2662 = vtanh.f32 %v3160_v26 }
 0x239   :  { %2664 = vtanh.f32 %v3162_v60 }
 0x242   :  { %v2663_v34 = vpop.eup %2662 }
 0x243   :  { %v2665_v49 = vpop.eup %2664  ;;  %v613_v13 = vmul.f32 %v2663_v34, %v2661_v36 }
 0x244   :  { %v614_v63 = vmul.f32 %v2665_v49, %v2659_v5 }
 0x245   :  { %v617_v44 = vrot.slane %v613_v13, 1 }
 0x247   :  { %v618_v21 = vsel %vm392_vm0, %v614_v63, %v617_v44 }
 0x248   :  { %685 = vmatmul.mubr.f32.vlgmr.msra.gmra.mrb[4].mxu0 %v618_v21  ;;  %756 = vmatmul.mubr.f32.vlgmr.msra.gmra.mrb[4].mxu1 %v618_v21 }
 0x249   :  { %2279 = vmatpush1.bf16.msra.mxu0 %v2943_v11  ;;  %2311 = vmatpush1.bf16.msra.mxu1 %v2946_v15 }
 0x24a   :  { %2281 = vmatprep.subr.bf16.mxu0 %v2950_v19  ;;  %2313 = vmatprep.subr.bf16.mxu1 %v2952_v20 }
 0x24b   :  { %914 = vmatprep.mubr.f32.mxu0 %v3448_v8  ;;  %985 = vmatprep.mubr.f32.mxu1 %v3448_v8 }
 0x24d   :  { %2283 = vmatpush1.bf16.msra.mxu0 %v2955_v24  ;;  %2315 = vmatpush1.bf16.msra.mxu1 %v2959_v28 }
 0x24e   :  { %2285 = vmatprep.subr.bf16.mxu0 %v2961_v29  ;;  %2317 = vmatprep.subr.bf16.mxu1 %v2963_v33 }
 0x251   :  { %2287 = vmatpush1.bf16.msra.mxu0 %v2966_v37  ;;  %2319 = vmatpush1.bf16.msra.mxu1 %v2970_v41 }
 0x252   :  { %2289 = vmatprep.subr.bf16.mxu0 %v2972_v42  ;;  %2321 = vmatprep.subr.bf16.mxu1 %v2975_v46 }
 0x255   :  { %2291 = vmatpush1.bf16.msra.mxu0 %v2978_v53  ;;  %2323 = vmatpush1.bf16.msra.mxu1 %v2982_v54 }
 0x256   :  { %2293 = vmatprep.subr.bf16.mxu0 %v2984_v55  ;;  %2325 = vmatprep.subr.bf16.mxu1 %v2987_v59 }
 0x259   :  { %2295 = vmatpush1.bf16.msra.mxu0 %v2990_v2  ;;  %2327 = vmatpush1.bf16.msra.mxu1 %v2994_v3 }
 0x25a   :  { %2297 = vmatprep.subr.bf16.mxu0 %v2996_v4  ;;  %2329 = vmatprep.subr.bf16.mxu1 %v2999_v9 }
 0x25d   :  { %2299 = vmatpush1.bf16.msra.mxu0 %v3002_v18  ;;  %2331 = vmatpush1.bf16.msra.mxu1 %v3006_v22 }
 0x25e   :  { %2301 = vmatprep.subr.bf16.mxu0 %v3008_v23  ;;  %2333 = vmatprep.subr.bf16.mxu1 %v3014_v30 }
 0x261   :  { %2303 = vmatpush1.bf16.msra.mxu0 %v3020_v39  ;;  %2335 = vmatpush1.bf16.msra.mxu1 %v3024_v40 }
 0x262   :  { %2305 = vmatprep.subr.bf16.mxu0 %v3026_v43  ;;  %2337 = vmatprep.subr.bf16.mxu1 %v3029_v47 }
 0x265   :  { %2307 = vmatpush1.bf16.msra.mxu0 %v3032_v50  ;;  %2339 = vmatpush1.bf16.msra.mxu1 %v3036_v51 }
 0x266   :  { %2341 = vmatprep.subr.bf16.mxu0 %v2939_v6  ;;  %2373 = vmatprep.subr.bf16.mxu1 %v2941_v10 }
 0x31b   :  { %v686_v31 = vpop.f32.mrb[4].mxu0  ;;  %v757_v45 = vpop.f32.mrb[4].mxu1 }
 0x31c   :  { %v766_v56 = vrot.slane %v686_v31, 6  ;;  %v770_v48 = vrot.slane %v686_v31, 7  ;;  %v688_v57 = vpop.f32.mrb[5].mxu0  ;;  %v759_v38 = vpop.f32.mrb[5].mxu1  ;;  %v768_v36 = vrot.slane %v757_v45, 6  ;;  %v772_v34 = vrot.slane %v757_v45, 7 }
 0x31d   :  { %v767_v58 = vrot.slane %v688_v57, 6  ;;  %v771_v0 = vrot.slane %v688_v57, 7  ;;  %v769_v63 = vrot.slane %v759_v38, 6  ;;  %v773_v31 = vrot.slane %v759_v38, 7 }
 0x31e   :  { %v782_v7 = vadd.f32 %v766_v56, %v3085_v25  ;;  %v786_v61 = vadd.f32 %v770_v48, %v3089_v32  ;;  %v784_v44 = vadd.f32 %v768_v36, %v3095_v62  ;;  %v788_v21 = vadd.f32 %v772_v34, %v3098_v12 }
 0x31f   :  { %v783_v14 = vadd.f32 %v767_v58, %v3087_v27  ;;  %v787_v16 = vadd.f32 %v771_v0, %v3092_v52  ;;  %v785_v56 = vadd.f32 %v769_v63, %v3103_v1  ;;  %v789_v58 = vadd.f32 %v773_v31, %v3105_v35 }
 0x320   :  { %v2046_v17 = vmul.f32 -1.442695, %v782_v7  ;;  %v2049_v5 = vmul.f32 -1.442695, %v786_v61  ;;  %v2048_v48 = vmul.f32 -1.442695, %v784_v44 }
 0x321   :  { %v2047_v49 = vmul.f32 -1.442695, %v783_v14  ;;  %v2050_v13 = vmul.f32 -1.442695, %v787_v16  ;;  %v2051_v57 = vmul.f32 -1.442695, %v788_v21 }
 0x322   :  { %2666 = vpow2.f32 %v2046_v17  ;;  %v830_v31 = vrot.slane %v3160_v26, 7 }
 0x323   :  { %2668 = vpow2.f32 %v2049_v5 }
 0x324   :  { %2670 = vpow2.f32 %v2047_v49 }
 0x325   :  { %2672 = vpow2.f32 %v2050_v13 }
 0x326   :  { %2674 = vtanh.f32 %v785_v56 }
 0x327   :  { %2676 = vpow2.f32 %v2048_v48 }
 0x328   :  { %2678 = vpow2.f32 %v2051_v57  ;;  %v831_v57 = vrot.slane %v3162_v60, 7 }
 0x329   :  { %2680 = vtanh.f32 %v789_v58 }
 0x32c   :  { %v2667_v45 = vpop.eup %2666 }
 0x32d   :  { %v2669_v0 = vpop.eup %2668  ;;  %v808_v7 = vadd.f32 1.0, %v2667_v45 }
 0x32e   :  { %v811_v61 = vadd.f32 1.0, %v2669_v0  ;;  %v2671_v14 = vpop.eup %2670 }
 0x32f   :  { %2682 = vrcp.f32 %v808_v7  ;;  %v2673_v16 = vpop.eup %2672  ;;  %v809_v38 = vadd.f32 1.0, %v2671_v14 }
 0x330   :  { %2684 = vrcp.f32 %v811_v61  ;;  %v812_v17 = vadd.f32 1.0, %v2673_v16  ;;  %v2675_v5 = vpop.eup %2674 }
 0x331   :  { %2686 = vrcp.f32 %v809_v38  ;;  %v2677_v36 = vpop.eup %2676 }
 0x332   :  { %2688 = vrcp.f32 %v812_v17  ;;  %v2679_v34 = vpop.eup %2678  ;;  %v810_v56 = vadd.f32 1.0, %v2677_v36 }
 0x333   :  { %v2681_v49 = vpop.eup %2680  ;;  %v813_v58 = vadd.f32 1.0, %v2679_v34 }
 0x334   :  { %2690 = vrcp.f32 %v810_v56 }
 0x335   :  { %2692 = vrcp.f32 %v813_v58 }
 0x339   :  { %v2683_v13 = vpop.eup %2682 }
 0x33a   :  { %v2685_v63 = vpop.eup %2684  ;;  %v836_v44 = vmul.f32 %v2683_v13, %v2675_v5 }
 0x33b   :  { %v837_v21 = vmul.f32 %v2685_v63, %v2681_v49  ;;  %v2687_v48 = vpop.eup %2686 }
 0x33c   :  { %v2689_v45 = vpop.eup %2688  ;;  %v834_v0 = vmul.f32 %v2687_v48, %v830_v31 }
 0x33d   :  { %v835_v7 = vmul.f32 %v2689_v45, %v831_v57 }
 0x33e   :  { %v3211_v61 = vadd.f32 %v836_v44, %v834_v0  ;;  %v2691_v16 = vpop.eup %2690 }
 0x33f   :  { %v3213_v14 = vadd.f32 %v837_v21, %v835_v7  ;;  %v2693_v26 = vpop.eup %2692 }
 0x340   :  { %2694 = vtanh.f32 %v3211_v61 }
 0x341   :  { %2696 = vtanh.f32 %v3213_v14 }
 0x34a   :  { %v2695_v38 = vpop.eup %2694 }
 0x34b   :  { %v2697_v17 = vpop.eup %2696  ;;  %v842_v5 = vmul.f32 %v2695_v38, %v2691_v16 }
 0x34c   :  { %v843_v60 = vmul.f32 %v2697_v17, %v2693_v26 }
 0x34d   :  { %v846_v36 = vrot.slane %v842_v5, 2 }
 0x34e   :  { %v847_v34 = vrot.slane %v843_v60, 1 }
 0x350   :  { %v848_v49 = vsel %vm392_vm0, %v847_v34, %v846_v36 }
 0x351   :  { %915 = vmatmul.mubr.f32.vlgmr.msra.gmra.mrb[6].mxu0 %v848_v49  ;;  %986 = vmatmul.mubr.f32.vlgmr.msra.gmra.mrb[6].mxu1 %v848_v49 }
 0x352   :  { %2343 = vmatpush1.bf16.msra.mxu0 %v2943_v11  ;;  %2375 = vmatpush1.bf16.msra.mxu1 %v2946_v15 }
 0x353   :  { %2345 = vmatprep.subr.bf16.mxu0 %v2950_v19  ;;  %2377 = vmatprep.subr.bf16.mxu1 %v2952_v20 }
 0x354   :  { %1144 = vmatprep.mubr.f32.mxu0 %v3448_v8  ;;  %1215 = vmatprep.mubr.f32.mxu1 %v3448_v8 }
 0x356   :  { %2347 = vmatpush1.bf16.msra.mxu0 %v2955_v24  ;;  %2379 = vmatpush1.bf16.msra.mxu1 %v2959_v28 }
 0x357   :  { %2349 = vmatprep.subr.bf16.mxu0 %v2961_v29  ;;  %2381 = vmatprep.subr.bf16.mxu1 %v2963_v33 }
 0x35a   :  { %2351 = vmatpush1.bf16.msra.mxu0 %v2966_v37  ;;  %2383 = vmatpush1.bf16.msra.mxu1 %v2970_v41 }
 0x35b   :  { %2353 = vmatprep.subr.bf16.mxu0 %v2972_v42  ;;  %2385 = vmatprep.subr.bf16.mxu1 %v2975_v46 }
 0x35e   :  { %2355 = vmatpush1.bf16.msra.mxu0 %v2978_v53  ;;  %2387 = vmatpush1.bf16.msra.mxu1 %v2982_v54 }
 0x35f   :  { %2357 = vmatprep.subr.bf16.mxu0 %v2984_v55  ;;  %2389 = vmatprep.subr.bf16.mxu1 %v2987_v59 }
 0x362   :  { %2359 = vmatpush1.bf16.msra.mxu0 %v2990_v2  ;;  %2391 = vmatpush1.bf16.msra.mxu1 %v2994_v3 }
 0x363   :  { %2361 = vmatprep.subr.bf16.mxu0 %v2996_v4  ;;  %2393 = vmatprep.subr.bf16.mxu1 %v2999_v9 }
 0x366   :  { %2363 = vmatpush1.bf16.msra.mxu0 %v3002_v18  ;;  %2395 = vmatpush1.bf16.msra.mxu1 %v3006_v22 }
 0x367   :  { %2365 = vmatprep.subr.bf16.mxu0 %v3008_v23  ;;  %2397 = vmatprep.subr.bf16.mxu1 %v3014_v30 }
 0x36a   :  { %2367 = vmatpush1.bf16.msra.mxu0 %v3020_v39  ;;  %2399 = vmatpush1.bf16.msra.mxu1 %v3024_v40 }
 0x36b   :  { %2369 = vmatprep.subr.bf16.mxu0 %v3026_v43  ;;  %2401 = vmatprep.subr.bf16.mxu1 %v3029_v47 }
 0x36e   :  { %2371 = vmatpush1.bf16.msra.mxu0 %v3032_v50  ;;  %2403 = vmatpush1.bf16.msra.mxu1 %v3036_v51 }
 0x36f   :  { %2405 = vmatprep.subr.bf16.mxu0 %v2939_v6  ;;  %2437 = vmatprep.subr.bf16.mxu1 %v2941_v10 }
 0x424   :  { %v916_v13 = vpop.f32.mrb[6].mxu0  ;;  %v987_v63 = vpop.f32.mrb[6].mxu1 }
 0x425   :  { %v996_v44 = vrot.slane %v916_v13, 5  ;;  %v1000_v21 = vrot.slane %v916_v13, 6  ;;  %v918_v31 = vpop.f32.mrb[7].mxu0  ;;  %v989_v56 = vpop.f32.mrb[7].mxu1  ;;  %v998_v38 = vrot.slane %v987_v63, 5  ;;  %v1002_v17 = vrot.slane %v987_v63, 6 }
 0x426   :  { %v997_v48 = vrot.slane %v918_v31, 5  ;;  %v1001_v57 = vrot.slane %v918_v31, 6  ;;  %v999_v36 = vrot.slane %v989_v56, 5  ;;  %v1003_v13 = vrot.slane %v989_v56, 6 }
 0x427   :  { %v1012_v58 = vadd.f32 %v996_v44, %v3085_v25  ;;  %v1016_v45 = vadd.f32 %v1000_v21, %v3089_v32  ;;  %v1014_v34 = vadd.f32 %v998_v38, %v3095_v62  ;;  %v1018_v49 = vadd.f32 %v1002_v17, %v3098_v12 }
 0x428   :  { %v1013_v0 = vadd.f32 %v997_v48, %v3087_v27  ;;  %v1017_v7 = vadd.f32 %v1001_v57, %v3092_v52  ;;  %v1015_v44 = vadd.f32 %v999_v36, %v3103_v1  ;;  %v1019_v48 = vadd.f32 %v1003_v13, %v3105_v35 }
 0x429   :  { %v2052_v16 = vmul.f32 -1.442695, %v1012_v58  ;;  %v2055_v26 = vmul.f32 -1.442695, %v1016_v45  ;;  %v2054_v21 = vmul.f32 -1.442695, %v1014_v34 }
 0x42a   :  { %v2053_v5 = vmul.f32 -1.442695, %v1013_v0  ;;  %v2056_v60 = vmul.f32 -1.442695, %v1017_v7  ;;  %v2057_v31 = vmul.f32 -1.442695, %v1018_v49 }
 0x42b   :  { %2698 = vpow2.f32 %v2052_v16  ;;  %v1060_v13 = vrot.slane %v3211_v61, 7 }
 0x42c   :  { %2700 = vpow2.f32 %v2055_v26 }
 0x42d   :  { %2702 = vpow2.f32 %v2053_v5 }
 0x42e   :  { %2704 = vpow2.f32 %v2056_v60 }
 0x42f   :  { %2706 = vtanh.f32 %v1015_v44 }
 0x430   :  { %2708 = vpow2.f32 %v2054_v21 }
 0x431   :  { %2710 = vpow2.f32 %v2057_v31  ;;  %v1061_v31 = vrot.slane %v3213_v14, 7 }
 0x432   :  { %2712 = vtanh.f32 %v1019_v48 }
 0x435   :  { %v2699_v63 = vpop.eup %2698 }
 0x436   :  { %v2701_v57 = vpop.eup %2700  ;;  %v1038_v58 = vadd.f32 1.0, %v2699_v63 }
 0x437   :  { %v1041_v45 = vadd.f32 1.0, %v2701_v57  ;;  %v2703_v0 = vpop.eup %2702 }
 0x438   :  { %2714 = vrcp.f32 %v1038_v58  ;;  %v2705_v7 = vpop.eup %2704  ;;  %v1039_v56 = vadd.f32 1.0, %v2703_v0 }
 0x439   :  { %2716 = vrcp.f32 %v1041_v45  ;;  %v1042_v16 = vadd.f32 1.0, %v2705_v7  ;;  %v2707_v26 = vpop.eup %2706 }
 0x43a   :  { %2718 = vrcp.f32 %v1039_v56  ;;  %v2709_v38 = vpop.eup %2708 }
 0x43b   :  { %2720 = vrcp.f32 %v1042_v16  ;;  %v2711_v17 = vpop.eup %2710  ;;  %v1040_v44 = vadd.f32 1.0, %v2709_v38 }
 0x43c   :  { %v2713_v5 = vpop.eup %2712  ;;  %v1043_v48 = vadd.f32 1.0, %v2711_v17 }
 0x43d   :  { %2722 = vrcp.f32 %v1040_v44 }
 0x43e   :  { %2724 = vrcp.f32 %v1043_v48 }
 0x442   :  { %v2715_v60 = vpop.eup %2714 }
 0x443   :  { %v2717_v36 = vpop.eup %2716  ;;  %v1066_v34 = vmul.f32 %v2715_v60, %v2707_v26 }
 0x444   :  { %v1067_v49 = vmul.f32 %v2717_v36, %v2713_v5  ;;  %v2719_v21 = vpop.eup %2718 }
 0x445   :  { %v2721_v63 = vpop.eup %2720  ;;  %v1064_v57 = vmul.f32 %v2719_v21, %v1060_v13 }
 0x446   :  { %v1065_v58 = vmul.f32 %v2721_v63, %v1061_v31 }
 0x447   :  { %v3262_v45 = vadd.f32 %v1066_v34, %v1064_v57  ;;  %v2723_v7 = vpop.eup %2722 }
 0x448   :  { %v3264_v0 = vadd.f32 %v1067_v49, %v1065_v58  ;;  %v2725_v61 = vpop.eup %2724 }
 0x449   :  { %2726 = vtanh.f32 %v3262_v45 }
 0x44a   :  { %2728 = vtanh.f32 %v3264_v0 }
 0x453   :  { %v2727_v56 = vpop.eup %2726 }
 0x454   :  { %v2729_v16 = vpop.eup %2728  ;;  %v1072_v26 = vmul.f32 %v2727_v56, %v2723_v7 }
 0x455   :  { %v1073_v14 = vmul.f32 %v2729_v16, %v2725_v61 }
 0x456   :  { %v1076_v38 = vrot.slane %v1072_v26, 3 }
 0x457   :  { %v1077_v17 = vrot.slane %v1073_v14, 2 }
 0x459   :  { %v1078_v5 = vsel %vm392_vm0, %v1077_v17, %v1076_v38 }
 0x45a   :  { %1145 = vmatmul.mubr.f32.vlgmr.msra.gmra.mrb[8].mxu0 %v1078_v5  ;;  %1216 = vmatmul.mubr.f32.vlgmr.msra.gmra.mrb[8].mxu1 %v1078_v5 }
 0x45b   :  { %2407 = vmatpush1.bf16.msra.mxu0 %v2943_v11  ;;  %2439 = vmatpush1.bf16.msra.mxu1 %v2946_v15 }
 0x45c   :  { %2409 = vmatprep.subr.bf16.mxu0 %v2950_v19  ;;  %2441 = vmatprep.subr.bf16.mxu1 %v2952_v20 }
 0x45d   :  { %1374 = vmatprep.mubr.f32.mxu0 %v3448_v8  ;;  %1445 = vmatprep.mubr.f32.mxu1 %v3448_v8 }
 0x45f   :  { %2411 = vmatpush1.bf16.msra.mxu0 %v2955_v24  ;;  %2443 = vmatpush1.bf16.msra.mxu1 %v2959_v28 }
 0x460   :  { %2413 = vmatprep.subr.bf16.mxu0 %v2961_v29  ;;  %2445 = vmatprep.subr.bf16.mxu1 %v2963_v33 }
 0x463   :  { %2415 = vmatpush1.bf16.msra.mxu0 %v2966_v37  ;;  %2447 = vmatpush1.bf16.msra.mxu1 %v2970_v41 }
 0x464   :  { %2417 = vmatprep.subr.bf16.mxu0 %v2972_v42  ;;  %2449 = vmatprep.subr.bf16.mxu1 %v2975_v46 }
 0x467   :  { %2419 = vmatpush1.bf16.msra.mxu0 %v2978_v53  ;;  %2451 = vmatpush1.bf16.msra.mxu1 %v2982_v54 }
 0x468   :  { %2421 = vmatprep.subr.bf16.mxu0 %v2984_v55  ;;  %2453 = vmatprep.subr.bf16.mxu1 %v2987_v59 }
 0x46b   :  { %2423 = vmatpush1.bf16.msra.mxu0 %v2990_v2  ;;  %2455 = vmatpush1.bf16.msra.mxu1 %v2994_v3 }
 0x46c   :  { %2425 = vmatprep.subr.bf16.mxu0 %v2996_v4  ;;  %2457 = vmatprep.subr.bf16.mxu1 %v2999_v9 }
 0x46f   :  { %2427 = vmatpush1.bf16.msra.mxu0 %v3002_v18  ;;  %2459 = vmatpush1.bf16.msra.mxu1 %v3006_v22 }
 0x470   :  { %2429 = vmatprep.subr.bf16.mxu0 %v3008_v23  ;;  %2461 = vmatprep.subr.bf16.mxu1 %v3014_v30 }
 0x473   :  { %2431 = vmatpush1.bf16.msra.mxu0 %v3020_v39  ;;  %2463 = vmatpush1.bf16.msra.mxu1 %v3024_v40 }
 0x474   :  { %2433 = vmatprep.subr.bf16.mxu0 %v3026_v43  ;;  %2465 = vmatprep.subr.bf16.mxu1 %v3029_v47 }
 0x477   :  { %2435 = vmatpush1.bf16.msra.mxu0 %v3032_v50  ;;  %2467 = vmatpush1.bf16.msra.mxu1 %v3036_v51 }
 0x478   :  { %2469 = vmatprep.subr.bf16.mxu0 %v2939_v6  ;;  %2501 = vmatprep.subr.bf16.mxu1 %v2941_v10 }
 0x52d   :  { %v1146_v60 = vpop.f32.mrb[8].mxu0  ;;  %v1217_v36 = vpop.f32.mrb[8].mxu1 }
 0x52e   :  { %v1226_v34 = vrot.slane %v1146_v60, 4  ;;  %v1230_v49 = vrot.slane %v1146_v60, 5  ;;  %v1148_v13 = vpop.f32.mrb[9].mxu0  ;;  %v1219_v44 = vpop.f32.mrb[9].mxu1  ;;  %v1228_v56 = vrot.slane %v1217_v36, 4  ;;  %v1232_v16 = vrot.slane %v1217_v36, 5 }
 0x52f   :  { %v1227_v21 = vrot.slane %v1148_v13, 4  ;;  %v1231_v31 = vrot.slane %v1148_v13, 5  ;;  %v1229_v38 = vrot.slane %v1219_v44, 4  ;;  %v1233_v60 = vrot.slane %v1219_v44, 5 }
 0x530   :  { %v1242_v48 = vadd.f32 %v1226_v34, %v3085_v25  ;;  %v1246_v63 = vadd.f32 %v1230_v49, %v3089_v32  ;;  %v1244_v17 = vadd.f32 %v1228_v56, %v3095_v62  ;;  %v1248_v5 = vadd.f32 %v1232_v16, %v3098_v12 }
 0x531   :  { %v1243_v57 = vadd.f32 %v1227_v21, %v3087_v27  ;;  %v1247_v58 = vadd.f32 %v1231_v31, %v3092_v52  ;;  %v1245_v34 = vadd.f32 %v1229_v38, %v3103_v1  ;;  %v1249_v21 = vadd.f32 %v1233_v60, %v3105_v35 }
 0x532   :  { %v2058_v7 = vmul.f32 -1.442695, %v1242_v48  ;;  %v2061_v61 = vmul.f32 -1.442695, %v1246_v63  ;;  %v2060_v49 = vmul.f32 -1.442695, %v1244_v17 }
 0x533   :  { %v2059_v26 = vmul.f32 -1.442695, %v1243_v57  ;;  %v2062_v14 = vmul.f32 -1.442695, %v1247_v58  ;;  %v2063_v13 = vmul.f32 -1.442695, %v1248_v5 }
 0x534   :  { %2730 = vpow2.f32 %v2058_v7  ;;  %v1290_v60 = vrot.slane %v3262_v45, 7 }
 0x535   :  { %2732 = vpow2.f32 %v2061_v61 }
 0x536   :  { %2734 = vpow2.f32 %v2059_v26 }
 0x537   :  { %2736 = vpow2.f32 %v2062_v14 }
 0x538   :  { %2738 = vtanh.f32 %v1245_v34 }
 0x539   :  { %2740 = vpow2.f32 %v2060_v49 }
 0x53a   :  { %2742 = vpow2.f32 %v2063_v13  ;;  %v1291_v13 = vrot.slane %v3264_v0, 7 }
 0x53b   :  { %2744 = vtanh.f32 %v1249_v21 }
 0x53e   :  { %v2731_v36 = vpop.eup %2730 }
 0x53f   :  { %v2733_v31 = vpop.eup %2732  ;;  %v1268_v48 = vadd.f32 1.0, %v2731_v36 }
 0x540   :  { %v1271_v63 = vadd.f32 1.0, %v2733_v31  ;;  %v2735_v57 = vpop.eup %2734 }
 0x541   :  { %2746 = vrcp.f32 %v1268_v48  ;;  %v2737_v58 = vpop.eup %2736  ;;  %v1269_v44 = vadd.f32 1.0, %v2735_v57 }
 0x542   :  { %2748 = vrcp.f32 %v1271_v63  ;;  %v1272_v7 = vadd.f32 1.0, %v2737_v58  ;;  %v2739_v61 = vpop.eup %2738 }
 0x543   :  { %2750 = vrcp.f32 %v1269_v44  ;;  %v2741_v56 = vpop.eup %2740 }
 0x544   :  { %2752 = vrcp.f32 %v1272_v7  ;;  %v2743_v16 = vpop.eup %2742  ;;  %v1270_v34 = vadd.f32 1.0, %v2741_v56 }
 0x545   :  { %v2745_v26 = vpop.eup %2744  ;;  %v1273_v21 = vadd.f32 1.0, %v2743_v16 }
 0x546   :  { %2754 = vrcp.f32 %v1270_v34 }
 0x547   :  { %2756 = vrcp.f32 %v1273_v21 }
 0x54b   :  { %v2747_v14 = vpop.eup %2746 }
 0x54c   :  { %v2749_v38 = vpop.eup %2748  ;;  %v1296_v17 = vmul.f32 %v2747_v14, %v2739_v61 }
 0x54d   :  { %v1297_v5 = vmul.f32 %v2749_v38, %v2745_v26  ;;  %v2751_v49 = vpop.eup %2750 }
 0x54e   :  { %v2753_v36 = vpop.eup %2752  ;;  %v1294_v31 = vmul.f32 %v2751_v49, %v1290_v60 }
 0x54f   :  { %v1295_v48 = vmul.f32 %v2753_v36, %v1291_v13 }
 0x550   :  { %v3313_v63 = vadd.f32 %v1296_v17, %v1294_v31  ;;  %v2755_v58 = vpop.eup %2754 }
 0x551   :  { %v3315_v57 = vadd.f32 %v1297_v5, %v1295_v48  ;;  %v2757_v45 = vpop.eup %2756 }
 0x552   :  { %2758 = vtanh.f32 %v3313_v63 }
 0x553   :  { %2760 = vtanh.f32 %v3315_v57 }
 0x55c   :  { %v2759_v44 = vpop.eup %2758 }
 0x55d   :  { %v2761_v7 = vpop.eup %2760  ;;  %v1302_v61 = vmul.f32 %v2759_v44, %v2755_v58 }
 0x55e   :  { %v1303_v0 = vmul.f32 %v2761_v7, %v2757_v45 }
 0x55f   :  { %v1306_v56 = vrot.slane %v1302_v61, 4 }
 0x560   :  { %v1307_v16 = vrot.slane %v1303_v0, 3 }
 0x562   :  { %v1308_v26 = vsel %vm392_vm0, %v1307_v16, %v1306_v56 }
 0x563   :  { %1375 = vmatmul.mubr.f32.vlgmr.msra.gmra.mrb[10].mxu0 %v1308_v26  ;;  %1446 = vmatmul.mubr.f32.vlgmr.msra.gmra.mrb[10].mxu1 %v1308_v26 }
 0x564   :  { %2471 = vmatpush1.bf16.msra.mxu0 %v2943_v11  ;;  %2503 = vmatpush1.bf16.msra.mxu1 %v2946_v15 }
 0x565   :  { %2473 = vmatprep.subr.bf16.mxu0 %v2950_v19  ;;  %2505 = vmatprep.subr.bf16.mxu1 %v2952_v20 }
 0x566   :  { %1604 = vmatprep.mubr.f32.mxu0 %v3448_v8  ;;  %1675 = vmatprep.mubr.f32.mxu1 %v3448_v8 }
 0x568   :  { %2475 = vmatpush1.bf16.msra.mxu0 %v2955_v24  ;;  %2507 = vmatpush1.bf16.msra.mxu1 %v2959_v28 }
 0x569   :  { %2477 = vmatprep.subr.bf16.mxu0 %v2961_v29  ;;  %2509 = vmatprep.subr.bf16.mxu1 %v2963_v33 }
 0x56c   :  { %2479 = vmatpush1.bf16.msra.mxu0 %v2966_v37  ;;  %2511 = vmatpush1.bf16.msra.mxu1 %v2970_v41 }
 0x56d   :  { %2481 = vmatprep.subr.bf16.mxu0 %v2972_v42  ;;  %2513 = vmatprep.subr.bf16.mxu1 %v2975_v46 }
 0x570   :  { %2483 = vmatpush1.bf16.msra.mxu0 %v2978_v53  ;;  %2515 = vmatpush1.bf16.msra.mxu1 %v2982_v54 }
 0x571   :  { %2485 = vmatprep.subr.bf16.mxu0 %v2984_v55  ;;  %2517 = vmatprep.subr.bf16.mxu1 %v2987_v59 }
 0x574   :  { %2487 = vmatpush1.bf16.msra.mxu0 %v2990_v2  ;;  %2519 = vmatpush1.bf16.msra.mxu1 %v2994_v3 }
 0x575   :  { %2489 = vmatprep.subr.bf16.mxu0 %v2996_v4  ;;  %2521 = vmatprep.subr.bf16.mxu1 %v2999_v9 }
 0x578   :  { %2491 = vmatpush1.bf16.msra.mxu0 %v3002_v18  ;;  %2523 = vmatpush1.bf16.msra.mxu1 %v3006_v22 }
 0x579   :  { %2493 = vmatprep.subr.bf16.mxu0 %v3008_v23  ;;  %2525 = vmatprep.subr.bf16.mxu1 %v3014_v30 }
 0x57c   :  { %2495 = vmatpush1.bf16.msra.mxu0 %v3020_v39  ;;  %2527 = vmatpush1.bf16.msra.mxu1 %v3024_v40 }
 0x57d   :  { %2497 = vmatprep.subr.bf16.mxu0 %v3026_v43  ;;  %2529 = vmatprep.subr.bf16.mxu1 %v3029_v47 }
 0x580   :  { %2499 = vmatpush1.bf16.msra.mxu0 %v3032_v50  ;;  %2531 = vmatpush1.bf16.msra.mxu1 %v3036_v51 }
 0x581   :  { %2533 = vmatprep.subr.bf16.mxu0 %v2939_v6  ;;  %2565 = vmatprep.subr.bf16.mxu1 %v2941_v10 }
 0x636   :  { %v1376_v14 = vpop.f32.mrb[10].mxu0  ;;  %v1447_v38 = vpop.f32.mrb[10].mxu1 }
 0x637   :  { %v1456_v17 = vrot.slane %v1376_v14, 3  ;;  %v1460_v5 = vrot.slane %v1376_v14, 4  ;;  %v1378_v60 = vpop.f32.mrb[11].mxu0  ;;  %v1449_v34 = vpop.f32.mrb[11].mxu1  ;;  %v1458_v45 = vrot.slane %v1447_v38, 3  ;;  %v1462_v10 = vrot.slane %v1447_v38, 4 }
 0x638   :  { %v1457_v49 = vrot.slane %v1378_v60, 3  ;;  %v1461_v13 = vrot.slane %v1378_v60, 4  ;;  %v1459_v61 = vrot.slane %v1449_v34, 3  ;;  %v1463_v16 = vrot.slane %v1449_v34, 4 }
 0x639   :  { %v1472_v21 = vadd.f32 %v1456_v17, %v3085_v25  ;;  %v1476_v36 = vadd.f32 %v1460_v5, %v3089_v32  ;;  %v1474_v0 = vadd.f32 %v1458_v45, %v3095_v62  ;;  %v1478_v56 = vadd.f32 %v1462_v10, %v3098_v12 }
 0x63a   :  { %v1473_v31 = vadd.f32 %v1457_v49, %v3087_v27  ;;  %v1477_v48 = vadd.f32 %v1461_v13, %v3092_v52  ;;  %v1475_v26 = vadd.f32 %v1459_v61, %v3103_v1  ;;  %v1479_v5 = vadd.f32 %v1463_v16, %v3105_v35 }
 0x63b   :  { %v2064_v58 = vmul.f32 -1.442695, %v1472_v21  ;;  %v2067_v6 = vmul.f32 -1.442695, %v1476_v36  ;;  %v2066_v14 = vmul.f32 -1.442695, %v1474_v0 }
 0x63c   :  { %v2065_v44 = vmul.f32 -1.442695, %v1473_v31  ;;  %v2068_v7 = vmul.f32 -1.442695, %v1477_v48  ;;  %v2069_v17 = vmul.f32 -1.442695, %v1478_v56 }
 0x63d   :  { %2762 = vpow2.f32 %v2064_v58  ;;  %v1520_v0 = vrot.slane %v3313_v63, 7 }
 0x63e   :  { %2764 = vpow2.f32 %v2067_v6 }
 0x63f   :  { %2766 = vpow2.f32 %v2065_v44 }
 0x640   :  { %2768 = vpow2.f32 %v2068_v7 }
 0x641   :  { %2770 = vtanh.f32 %v1475_v26  ;;  %v1521_v26 = vrot.slane %v3315_v57, 7 }
 0x642   :  { %2772 = vpow2.f32 %v2066_v14 }
 0x643   :  { %2774 = vpow2.f32 %v2069_v17 }
 0x644   :  { %2776 = vtanh.f32 %v1479_v5 }
 0x647   :  { %v2763_v38 = vpop.eup %2762 }
 0x648   :  { %v2765_v60 = vpop.eup %2764  ;;  %v1498_v49 = vadd.f32 1.0, %v2763_v38 }
 0x649   :  { %v1501_v13 = vadd.f32 1.0, %v2765_v60  ;;  %v2767_v21 = vpop.eup %2766 }
 0x64a   :  { %2778 = vrcp.f32 %v1498_v49  ;;  %v2769_v36 = vpop.eup %2768  ;;  %v1499_v34 = vadd.f32 1.0, %v2767_v21 }
 0x64b   :  { %2780 = vrcp.f32 %v1501_v13  ;;  %v1502_v31 = vadd.f32 1.0, %v2769_v36  ;;  %v2771_v48 = vpop.eup %2770 }
 0x64c   :  { %2782 = vrcp.f32 %v1499_v34  ;;  %v2773_v58 = vpop.eup %2772 }
 0x64d   :  { %2784 = vrcp.f32 %v1502_v31  ;;  %v2775_v6 = vpop.eup %2774  ;;  %v1500_v56 = vadd.f32 1.0, %v2773_v58 }
 0x64e   :  { %v2777_v45 = vpop.eup %2776  ;;  %v1503_v14 = vadd.f32 1.0, %v2775_v6 }
 0x64f   :  { %2786 = vrcp.f32 %v1500_v56 }
 0x650   :  { %2788 = vrcp.f32 %v1503_v14 }
 0x654   :  { %v2779_v10 = vpop.eup %2778 }
 0x655   :  { %v2781_v44 = vpop.eup %2780  ;;  %v1526_v7 = vmul.f32 %v2779_v10, %v2771_v48 }
 0x656   :  { %v1527_v61 = vmul.f32 %v2781_v44, %v2777_v45  ;;  %v2783_v16 = vpop.eup %2782 }
 0x657   :  { %v2785_v17 = vpop.eup %2784  ;;  %v1524_v5 = vmul.f32 %v2783_v16, %v1520_v0 }
 0x658   :  { %v1525_v38 = vmul.f32 %v2785_v17, %v1521_v26 }
 0x659   :  { %v3364_v60 = vadd.f32 %v1526_v7, %v1524_v5  ;;  %v2787_v13 = vpop.eup %2786 }
 0x65a   :  { %v3366_v49 = vadd.f32 %v1527_v61, %v1525_v38  ;;  %v2789_v63 = vpop.eup %2788 }
 0x65b   :  { %2790 = vtanh.f32 %v3364_v60  ;;  %v1750_v17 = vrot.slane %v3364_v60, 7 }
 0x65c   :  { %2792 = vtanh.f32 %v3366_v49 }
 0x665   :  { %v2791_v21 = vpop.eup %2790 }
 0x666   :  { %v2793_v36 = vpop.eup %2792  ;;  %v1532_v34 = vmul.f32 %v2791_v21, %v2787_v13  ;;  %v1751_v13 = vrot.slane %v3366_v49, 7 }
 0x667   :  { %v1533_v57 = vmul.f32 %v2793_v36, %v2789_v63 }
 0x668   :  { %v1536_v31 = vrot.slane %v1532_v34, 5 }
 0x669   :  { %v1537_v48 = vrot.slane %v1533_v57, 4 }
 0x66b   :  { %v1538_v58 = vsel %vm392_vm0, %v1537_v48, %v1536_v31 }
 0x66c   :  { %1605 = vmatmul.mubr.f32.vlgmr.msra.gmra.mrb[12].mxu0 %v1538_v58  ;;  %1676 = vmatmul.mubr.f32.vlgmr.msra.gmra.mrb[12].mxu1 %v1538_v58 }
 0x66d   :  { %2535 = vmatpush1.bf16.msra.mxu0 %v2943_v11  ;;  %2567 = vmatpush1.bf16.msra.mxu1 %v2946_v15 }
 0x66e   :  { %2537 = vmatprep.subr.bf16.mxu0 %v2950_v19  ;;  %2569 = vmatprep.subr.bf16.mxu1 %v2952_v20 }
 0x66f   :  { %1834 = vmatprep.mubr.f32.mxu0 %v3448_v8  ;;  %1905 = vmatprep.mubr.f32.mxu1 %v3448_v8 }
 0x671   :  { %2539 = vmatpush1.bf16.msra.mxu0 %v2955_v24  ;;  %2571 = vmatpush1.bf16.msra.mxu1 %v2959_v28 }
 0x672   :  { %2541 = vmatprep.subr.bf16.mxu0 %v2961_v29  ;;  %2573 = vmatprep.subr.bf16.mxu1 %v2963_v33 }
 0x675   :  { %2543 = vmatpush1.bf16.msra.mxu0 %v2966_v37  ;;  %2575 = vmatpush1.bf16.msra.mxu1 %v2970_v41 }
 0x676   :  { %2545 = vmatprep.subr.bf16.mxu0 %v2972_v42  ;;  %2577 = vmatprep.subr.bf16.mxu1 %v2975_v46 }
 0x679   :  { %2547 = vmatpush1.bf16.msra.mxu0 %v2978_v53  ;;  %2579 = vmatpush1.bf16.msra.mxu1 %v2982_v54 }
 0x67a   :  { %2549 = vmatprep.subr.bf16.mxu0 %v2984_v55  ;;  %2581 = vmatprep.subr.bf16.mxu1 %v2987_v59 }
 0x67d   :  { %2551 = vmatpush1.bf16.msra.mxu0 %v2990_v2  ;;  %2583 = vmatpush1.bf16.msra.mxu1 %v2994_v3 }
 0x67e   :  { %2553 = vmatprep.subr.bf16.mxu0 %v2996_v4  ;;  %2585 = vmatprep.subr.bf16.mxu1 %v2999_v9 }
 0x681   :  { %2555 = vmatpush1.bf16.msra.mxu0 %v3002_v18  ;;  %2587 = vmatpush1.bf16.msra.mxu1 %v3006_v22 }
 0x682   :  { %2557 = vmatprep.subr.bf16.mxu0 %v3008_v23  ;;  %2589 = vmatprep.subr.bf16.mxu1 %v3014_v30 }
 0x685   :  { %2559 = vmatpush1.bf16.msra.mxu0 %v3020_v39  ;;  %2591 = vmatpush1.bf16.msra.mxu1 %v3024_v40 }
 0x686   :  { %2561 = vmatprep.subr.bf16.mxu0 %v3026_v43  ;;  %2593 = vmatprep.subr.bf16.mxu1 %v3029_v47 }
 0x689   :  { %2563 = vmatpush1.bf16.msra.mxu0 %v3032_v50  ;;  %2595 = vmatpush1.bf16.msra.mxu1 %v3036_v51 }
 0x73f   :  { %v1606_v11 = vpop.f32.mrb[12].mxu0  ;;  %v1677_v15 = vpop.f32.mrb[12].mxu1 }
 0x740   :  { %v1686_v19 = vrot.slane %v1606_v11, 2  ;;  %v1690_v20 = vrot.slane %v1606_v11, 3  ;;  %v1608_v24 = vpop.f32.mrb[13].mxu0  ;;  %v1679_v28 = vpop.f32.mrb[13].mxu1  ;;  %v1688_v55 = vrot.slane %v1677_v15, 2  ;;  %v1692_v59 = vrot.slane %v1677_v15, 3 }
 0x741   :  { %v1687_v29 = vrot.slane %v1608_v24, 2  ;;  %v1691_v33 = vrot.slane %v1608_v24, 3  ;;  %v1689_v4 = vrot.slane %v1679_v28, 2  ;;  %v1693_v22 = vrot.slane %v1679_v28, 3 }
 0x742   :  { %v1702_v37 = vadd.f32 %v1686_v19, %v3085_v25  ;;  %v1706_v41 = vadd.f32 %v1690_v20, %v3089_v32  ;;  %v1704_v9 = vadd.f32 %v1688_v55, %v3095_v62  ;;  %v1708_v18 = vadd.f32 %v1692_v59, %v3098_v12 }
 0x743   :  { %v1703_v42 = vadd.f32 %v1687_v29, %v3087_v27  ;;  %v1707_v46 = vadd.f32 %v1691_v33, %v3092_v52  ;;  %v1705_v23 = vadd.f32 %v1689_v4, %v3103_v1  ;;  %v1709_v40 = vadd.f32 %v1693_v22, %v3105_v35 }
 0x744   :  { %v2070_v53 = vmul.f32 -1.442695, %v1702_v37  ;;  %v2073_v54 = vmul.f32 -1.442695, %v1706_v41  ;;  %v2072_v30 = vmul.f32 -1.442695, %v1704_v9 }
 0x745   :  { %v2071_v2 = vmul.f32 -1.442695, %v1703_v42  ;;  %v2074_v3 = vmul.f32 -1.442695, %v1707_v46  ;;  %v2075_v39 = vmul.f32 -1.442695, %v1708_v18 }
 0x746   :  { %2794 = vpow2.f32 %v2070_v53 }
 0x747   :  { %2796 = vpow2.f32 %v2073_v54 }
 0x748   :  { %2798 = vpow2.f32 %v2071_v2 }
 0x749   :  { %2800 = vpow2.f32 %v2074_v3 }
 0x74a   :  { %2802 = vtanh.f32 %v1705_v23 }
 0x74b   :  { %2804 = vpow2.f32 %v2072_v30 }
 0x74c   :  { %2806 = vpow2.f32 %v2075_v39 }
 0x74d   :  { %2808 = vtanh.f32 %v1709_v40 }
 0x750   :  { %v2795_v43 = vpop.eup %2794 }
 0x751   :  { %v2797_v47 = vpop.eup %2796  ;;  %v1728_v50 = vadd.f32 1.0, %v2795_v43 }
 0x752   :  { %v1731_v51 = vadd.f32 1.0, %v2797_v47  ;;  %v2799_v8 = vpop.eup %2798 }
 0x753   :  { %2810 = vrcp.f32 %v1728_v50  ;;  %v2801_v6 = vpop.eup %2800  ;;  %v1729_v45 = vadd.f32 1.0, %v2799_v8 }
 0x754   :  { %2812 = vrcp.f32 %v1731_v51  ;;  %v1732_v10 = vadd.f32 1.0, %v2801_v6  ;;  %v2803_v44 = vpop.eup %2802 }
 0x755   :  { %2814 = vrcp.f32 %v1729_v45  ;;  %v2805_v7 = vpop.eup %2804 }
 0x756   :  { %2816 = vrcp.f32 %v1732_v10  ;;  %v2807_v61 = vpop.eup %2806  ;;  %v1730_v5 = vadd.f32 1.0, %v2805_v7 }
 0x757   :  { %v2809_v0 = vpop.eup %2808  ;;  %v1733_v63 = vadd.f32 1.0, %v2807_v61 }
 0x758   :  { %2818 = vrcp.f32 %v1730_v5 }
 0x759   :  { %2820 = vrcp.f32 %v1733_v63 }
 0x75d   :  { %v2811_v56 = vpop.eup %2810 }
 0x75e   :  { %v2813_v16 = vpop.eup %2812  ;;  %v1756_v26 = vmul.f32 %v2811_v56, %v2803_v44 }
 0x75f   :  { %v1757_v14 = vmul.f32 %v2813_v16, %v2809_v0  ;;  %v2815_v38 = vpop.eup %2814 }
 0x760   :  { %v2817_v21 = vpop.eup %2816  ;;  %v1754_v36 = vmul.f32 %v2815_v38, %v1750_v17 }
 0x761   :  { %v1755_v34 = vmul.f32 %v2817_v21, %v1751_v13 }
 0x762   :  { %v3413_v57 = vadd.f32 %v1756_v26, %v1754_v36  ;;  %v2819_v48 = vpop.eup %2818 }
 0x763   :  { %v3415_v31 = vadd.f32 %v1757_v14, %v1755_v34  ;;  %v2821_v60 = vpop.eup %2820 }
 0x764   :  { %2822 = vtanh.f32 %v3413_v57  ;;  %v1980_v26 = vrot.slane %v3413_v57, 7  ;;  %v2082_v57 = vld [vmem:[%s3443_s4] ss:$0 sm:$0xff] }
 0x765   :  { %2824 = vtanh.f32 %v3415_v31  ;;  %v1981_v17 = vrot.slane %v3415_v31, 7 }
 0x76e   :  { %v2823_v58 = vpop.eup %2822 }
 0x76f   :  { %v2825_v11 = vpop.eup %2824  ;;  %v1762_v15 = vmul.f32 %v2823_v58, %v2819_v48 }
 0x770   :  { %v1763_v49 = vmul.f32 %v2825_v11, %v2821_v60 }
 0x771   :  { %v1766_v19 = vrot.slane %v1762_v15, 6 }
 0x772   :  { %v1767_v20 = vrot.slane %v1763_v49, 5 }
 0x774   :  { %v1768_v24 = vsel %vm392_vm0, %v1767_v20, %v1766_v19 }
 0x775   :  { %1835 = vmatmul.mubr.f32.vlgmr.msra.gmra.mrb[14].mxu0 %v1768_v24  ;;  %1906 = vmatmul.mubr.f32.vlgmr.msra.gmra.mrb[14].mxu1 %v1768_v24 }
 0x848   :  { %v1836_v28 = vpop.f32.mrb[14].mxu0  ;;  %v1907_v29 = vpop.f32.mrb[14].mxu1 }
 0x849   :  { %v1916_v33 = vrot.slane %v1836_v28, 1  ;;  %v1920_v37 = vrot.slane %v1836_v28, 2  ;;  %v1838_v41 = vpop.f32.mrb[15].mxu0  ;;  %v1909_v42 = vpop.f32.mrb[15].mxu1  ;;  %v1918_v9 = vrot.slane %v1907_v29, 1  ;;  %v1922_v18 = vrot.slane %v1907_v29, 2 }
 0x84a   :  { %v1917_v46 = vrot.slane %v1838_v41, 1  ;;  %v1921_v53 = vrot.slane %v1838_v41, 2  ;;  %v1919_v30 = vrot.slane %v1909_v42, 1  ;;  %v2083_v28 = vld [vmem:[#allocation2] ss:$0 sm:$0xff] }
 0x84b   :  { %v1932_v54 = vadd.f32 %v1916_v33, %v3085_v25  ;;  %v1936_v55 = vadd.f32 %v1920_v37, %v3089_v32  ;;  %v1934_v39 = vadd.f32 %v1918_v9, %v3095_v62  ;;  %v1938_v40 = vadd.f32 %v1922_v18, %v3098_v12 }
 0x84c   :  { %v1933_v59 = vadd.f32 %v1917_v46, %v3087_v27  ;;  %v1937_v2 = vadd.f32 %v1921_v53, %v3092_v52  ;;  %v1923_v25 = vrot.slane %v1909_v42, 2  ;;  %v1935_v27 = vadd.f32 %v1919_v30, %v3103_v1 }
 0x84d   :  { %v2076_v3 = vmul.f32 -1.442695, %v1932_v54  ;;  %v2079_v4 = vmul.f32 -1.442695, %v1936_v55  ;;  %v2078_v32 = vmul.f32 -1.442695, %v1934_v39 }
 0x84e   :  { %v2077_v22 = vmul.f32 -1.442695, %v1933_v59  ;;  %v2080_v23 = vmul.f32 -1.442695, %v1937_v2  ;;  %v2081_v52 = vmul.f32 -1.442695, %v1938_v40  ;;  %v1939_v43 = vadd.f32 %v1923_v25, %v3105_v35 }
 0x84f   :  { %2826 = vpow2.f32 %v2076_v3 }
 0x850   :  { %2828 = vpow2.f32 %v2079_v4 }
 0x851   :  { %2830 = vpow2.f32 %v2077_v22 }
 0x852   :  { %2832 = vpow2.f32 %v2080_v23 }
 0x853   :  { %2834 = vtanh.f32 %v1935_v27 }
 0x854   :  { %2836 = vpow2.f32 %v2078_v32 }
 0x855   :  { %2838 = vpow2.f32 %v2081_v52 }
 0x856   :  { %2840 = vtanh.f32 %v1939_v43 }
 0x859   :  { %v2827_v47 = vpop.eup %2826 }
 0x85a   :  { %v2829_v50 = vpop.eup %2828  ;;  %v1958_v51 = vadd.f32 1.0, %v2827_v47 }
 0x85b   :  { %v1961_v8 = vadd.f32 1.0, %v2829_v50  ;;  %v2831_v62 = vpop.eup %2830 }
 0x85c   :  { %2842 = vrcp.f32 %v1958_v51  ;;  %v2833_v12 = vpop.eup %2832  ;;  %v1959_v6 = vadd.f32 1.0, %v2831_v62 }
 0x85d   :  { %2844 = vrcp.f32 %v1961_v8  ;;  %v1962_v45 = vadd.f32 1.0, %v2833_v12  ;;  %v2835_v1 = vpop.eup %2834 }
 0x85e   :  { %2846 = vrcp.f32 %v1959_v6  ;;  %v2837_v10 = vpop.eup %2836 }
 0x85f   :  { %2848 = vrcp.f32 %v1962_v45  ;;  %v2839_v44 = vpop.eup %2838  ;;  %v1960_v16 = vadd.f32 1.0, %v2837_v10 }
 0x860   :  { %v2841_v35 = vpop.eup %2840  ;;  %v1963_v5 = vadd.f32 1.0, %v2839_v44 }
 0x861   :  { %2850 = vrcp.f32 %v1960_v16 }
 0x862   :  { %2852 = vrcp.f32 %v1963_v5 }
 0x866   :  { %v2843_v7 = vpop.eup %2842 }
 0x867   :  { %v2845_v61 = vpop.eup %2844  ;;  %v1986_v0 = vmul.f32 %v2843_v7, %v2835_v1 }
 0x868   :  { %v1987_v56 = vmul.f32 %v2845_v61, %v2841_v35  ;;  %v2847_v14 = vpop.eup %2846 }
 0x869   :  { %v2849_v38 = vpop.eup %2848  ;;  %v1984_v13 = vmul.f32 %v2847_v14, %v1980_v26 }
 0x86a   :  { %v1985_v63 = vmul.f32 %v2849_v38, %v1981_v17 }
 0x86b   :  { %v1988_v21 = vadd.f32 %v1986_v0, %v1984_v13  ;;  %v2851_v34 = vpop.eup %2850 }
 0x86c   :  { %v1989_v36 = vadd.f32 %v1987_v56, %v1985_v63  ;;  %v2853_v48 = vpop.eup %2852 }
 0x86d   :  { %2854 = vtanh.f32 %v1988_v21 }
 0x86e   :  { %2856 = vtanh.f32 %v1989_v36 }
 0x877   :  { %v2855_v60 = vpop.eup %2854 }
 0x878   :  { %v2857_v58 = vpop.eup %2856  ;;  %v1992_v11 = vmul.f32 %v2855_v60, %v2851_v34 }
 0x879   :  { %v1993_v31 = vmul.f32 %v2857_v58, %v2853_v48 }
 0x87a   :  { %v2001_v15 = vmul.f32 %v2082_v57, %v1992_v11 }
 0x87b   :  { %v2002_v49 = vmul.f32 %v2082_v57, %v1993_v31 }
 0x87c   :  { %v2009_v19 = vsel %vm2008_vm1, %v2001_v15, 0.0 }
 0x87d   :  { %2010 = vadd.xlane.f32.xlu1 %v2009_v19  ;;  %v2005_v20 = vrot.slane %v2002_v49, 7 }
 0x87f   :  { %v2013_v24 = vsel %vm2012_vm2, %v2005_v20, 0.0 }
 0x881   :  { %2014 = vadd.xlane.f32.xlu1 %v2013_v24 }
 0x90a   :  { %v2011_v29 = vpop.xlane.xlu1 %2010 }
 0x90b   :  { %v2023_v33 = vadd.f32 %v2083_v28, %v2011_v29 }
 0x90d   :  { %2026 = vst.msk [vmem:[%s3445_s6 - $0x7] sm:$0x80] %vm2025_vm3, %v2023_v33 }
 0x90e   :  { %v2015_v37 = vpop.xlane.xlu1 %2014 }
 0x90f   :  { %v2024_v41 = vadd.f32 %v2083_v28, %v2015_v37 }
 0x911   :  { %2028 = vst.msk [vmem:[%s3445_s6 + $0x1] sm:$0x1] %vm2027_vm4, %v2024_v41 }
 0x912   :  { %2033 = vsyncpa [#allocation4], 1 }

</bundles_post_ra>
